<compile_context>
chip_gen: v7x
topology: tpu7x:2x2x1
jax: 0.10.0
libtpu: 0.0.40
codegen_flags: <defaults>
</compile_context>

<pallas_src>
import jax
import jax.numpy as jnp
from jax.experimental import pallas as pl
from jax.experimental.pallas import tpu as pltpu


# ----------------------------------------------------------------------------
# Fused forward kernel: one grid step == one batch sample.
# ----------------------------------------------------------------------------
def fused_forward_kernel(x_ref, w1_ref, b1_ref, w2_ref, b2_ref,
                         wfc1_ref, bfc1_ref, wfc2_ref, bfc2_ref, out_ref):
    f32 = jnp.float32
    x = x_ref[0]                                           # [16, 16]

    # conv1 (1->8, k=3, valid) + ReLU.  y1[i, j*8 + c]
    y1 = jnp.dot(x[0:14, :], w1_ref[0], preferred_element_type=f32)
    for ki in range(1, 3):
        y1 = y1 + jnp.dot(x[ki:ki + 14, :], w1_ref[ki],
                          preferred_element_type=f32)
    y1 = jnp.maximum(y1 + b1_ref[...], 0.0)                # [14, 112]

    # conv2 (8->16, k=3, valid) + ReLU.  y2[i, (j%2)*128 + (j//2)*16 + co]
    y2 = jnp.dot(y1[0:12, :], w2_ref[0], preferred_element_type=f32)
    for ki in range(1, 3):
        y2 = y2 + jnp.dot(y1[ki:ki + 12, :], w2_ref[ki],
                          preferred_element_type=f32)
    y2 = jnp.maximum(y2 + b2_ref[...], 0.0)                # [12, 256]

    # 2x2 max-pool: pair rows (i, i+1), then the two 128-lane halves
    # (j even / j odd).  pooled[c, i', j'] ends up at pmax[2*i', j'*16 + c].
    rmax = jnp.maximum(y2[0:11, :], y2[1:12, :])           # [11, 256]
    pmax = jnp.maximum(rmax[:, 0:128], rmax[:, 128:256])   # [11, 128]

    # Dropout(p=0.3): identity in eval mode.
    # Flatten + fc1 + ReLU: fc1 weights were pre-permuted to this pooled
    # layout (and zero-padded on the 32 unused lanes), so fc1 is the sum of
    # the 6 valid pooled rows times their weight blocks.
    h = bfc1_ref[...]                                      # [1, 288]
    for i in range(6):
        h = h + jnp.dot(pmax[2 * i:2 * i + 1, :], wfc1_ref[i],
                        preferred_element_type=f32)
    h = jnp.maximum(h, 0.0)

    # fc2 (288 -> 1) as a lane reduction (avoids an N=1 matmul).
    out = jnp.sum(h * wfc2_ref[...], axis=1, keepdims=True) + bfc2_ref[...]
    out_ref[0] = out                                       # [1, 1]


# ----------------------------------------------------------------------------
# One-time parameter preparation: fold im2col banding, the NCHW flatten
# permutation and all layout padding into the weights.
# ----------------------------------------------------------------------------
def prepare_params(params):
    w1, b1, w2, b2, fc1_w, fc1_b, fc2_w, fc2_b = params
    f32 = jnp.float32
    w1, b1 = w1.astype(f32), b1.astype(f32)
    w2, b2 = w2.astype(f32), b2.astype(f32)
    fc1_w, fc1_b = fc1_w.astype(f32), fc1_b.astype(f32)
    fc2_w, fc2_b = fc2_w.astype(f32), fc2_b.astype(f32)
    H1 = fc1_w.shape[1]                                    # 288

    # conv1: banded weights, one [16, 14*8] matrix per kernel row ki:
    #   W1[ki][w, j*8 + c] = w1[c, 0, ki, w - j]  for  w - j in {0,1,2}
    w1_tap = jnp.transpose(w1[:, 0, :, :], (1, 2, 0))      # [ki, kj, c]
    w1_banded = []
    for ki in range(3):
        cols = []
        for j in range(14):
            blk = jnp.zeros((16, 8), f32).at[j:j + 3, :].set(w1_tap[ki])
            cols.append(blk)
        w1_banded.append(jnp.concatenate(cols, axis=1))    # [16, 112]
    W1 = jnp.stack(w1_banded)                              # [3, 16, 112]
    b1_row = jnp.tile(b1, 14).reshape(1, 112)

    # conv2: banded weights, one [112, 256] matrix per kernel row ki.
    # Output lane = (j % 2)*128 + (j // 2)*16 + co; lanes 96-127 / 224-255
    # are unused padding (zero weights and bias).
    w2_banded = []
    for ki in range(3):
        band = jnp.transpose(w2[:, :, ki, :], (2, 1, 0)).reshape(24, 16)
        halves = []
        for jpar in range(2):
            cols = []
            for jh in range(6):
                j = 2 * jh + jpar
                blk = jnp.zeros((112, 16), f32).at[j * 8:(j + 3) * 8, :].set(band)
                cols.append(blk)
            cols.append(jnp.zeros((112, 32), f32))
            halves.append(jnp.concatenate(cols, axis=1))   # [112, 128]
        w2_banded.append(jnp.concatenate(halves, axis=1))  # [112, 256]
    W2 = jnp.stack(w2_banded)                              # [3, 112, 256]
    b2_half = jnp.concatenate([jnp.tile(b2, 6), jnp.zeros((32,), f32)])
    b2_row = jnp.concatenate([b2_half, b2_half]).reshape(1, 256)

    # fc1: re-permute rows from the PyTorch NCHW flatten order
    # (k = c*36 + i*6 + j) to the kernel's pooled layout
    # (piece i, lane j*16 + c; lanes 96-127 of each piece zeroed).
    Wfc1 = jnp.zeros((6, 128, H1), f32)
    co = jnp.arange(16)
    for i in range(6):
        for j in range(6):
            src = fc1_w[co * 36 + i * 6 + j, :]            # [16, H1]
            Wfc1 = Wfc1.at[i, j * 16:(j + 1) * 16, :].set(src)
    bfc1_row = fc1_b.reshape(1, H1)

    Wfc2_row = fc2_w.reshape(1, H1)                        # fc2_w is [H1, 1]
    bfc2_row = fc2_b.reshape(1, 1)

    return (W1, b1_row, W2, b2_row, Wfc1, bfc1_row, Wfc2_row, bfc2_row)


# ----------------------------------------------------------------------------
# Public forward wrapper (single fused pallas_call).
# ----------------------------------------------------------------------------
def mice_conv_forward(x, prepared):
    """x: [B, 1, 16, 16] float32 (NCHW).  Returns [B, 1]."""
    W1, b1r, W2, b2r, Wfc1, bfc1, Wfc2, bfc2 = prepared
    B = x.shape[0]
    assert x.shape[1:] == (1, 16, 16), x.shape
    H1 = Wfc1.shape[-1]
    x3 = x.reshape(B, 16, 16).astype(jnp.float32)

    out = pl.pallas_call(
        fused_forward_kernel,
        out_shape=jax.ShapeDtypeStruct((B, 1, 1), jnp.float32),
        grid_spec=pltpu.PrefetchScalarGridSpec(
            num_scalar_prefetch=0,
            grid=(B,),
            in_specs=[
                pl.BlockSpec((1, 16, 16), lambda b: (b, 0, 0)),    # image
                pl.BlockSpec((3, 16, 112), lambda b: (0, 0, 0)),   # conv1 W
                pl.BlockSpec((1, 112), lambda b: (0, 0)),          # conv1 b
                pl.BlockSpec((3, 112, 256), lambda b: (0, 0, 0)),  # conv2 W
                pl.BlockSpec((1, 256), lambda b: (0, 0)),          # conv2 b
                pl.BlockSpec((6, 128, H1), lambda b: (0, 0, 0)),   # fc1 W
                pl.BlockSpec((1, H1), lambda b: (0, 0)),           # fc1 b
                pl.BlockSpec((1, H1), lambda b: (0, 0)),           # fc2 w
                pl.BlockSpec((1, 1), lambda b: (0, 0)),            # fc2 b
            ],
            out_specs=pl.BlockSpec((1, 1, 1), lambda b: (b, 0, 0)),
        ),
        compiler_params=pltpu.CompilerParams(
            dimension_semantics=("parallel",)),
    )(x3, W1, b1r, W2, b2r, Wfc1, bfc1, Wfc2, bfc2)
    return out.reshape(B, 1)


# ----------------------------------------------------------------------------
# Pure-JAX reference (for correctness check)
# ----------------------------------------------------------------------------
def ref_forward(x, params):
    w1, b1, w2, b2, fc1_w, fc1_b, fc2_w, fc2_b = params
    dn = ("NCHW", "OIHW", "NCHW")
    y = jax.lax.conv_general_dilated(x, w1, (1, 1), "VALID",
                                     dimension_numbers=dn)
    y = jnp.maximum(y + b1[None, :, None, None], 0.0)
    y = jax.lax.conv_general_dilated(y, w2, (1, 1), "VALID",
                                     dimension_numbers=dn)
    y = jnp.maximum(y + b2[None, :, None, None], 0.0)
    y = jax.lax.reduce_window(y, -jnp.inf, jax.lax.max,
                              (1, 1, 2, 2), (1, 1, 2, 2), "VALID")
    y = y.reshape(y.shape[0], -1)
    y = jnp.maximum(y @ fc1_w + fc1_b, 0.0)
    return y @ fc2_w + fc2_b


# ----------------------------------------------------------------------------
# Main
# ----------------------------------------------------------------------------
if __name__ == "__main__":
    key = jax.random.PRNGKey(0)
    (k_x, k_w1, k_b1, k_w2, k_b2,
     k_f1w, k_f1b, k_f2w, k_f2b) = jax.random.split(key, 9)

    B = 2
    input_size = 576                                # 16 * 6 * 6 (16x16 input)
    x = jax.random.normal(k_x, (B, 1, 16, 16), jnp.float32)

    # Deterministic parameter init (shapes from MiceConv.__init__)
    w1 = 0.1 * jax.random.normal(k_w1, (8, 1, 3, 3), jnp.float32)
    b1 = 0.1 * jax.random.normal(k_b1, (8,), jnp.float32)
    w2 = 0.1 * jax.random.normal(k_w2, (16, 8, 3, 3), jnp.float32)
    b2 = 0.1 * jax.random.normal(k_b2, (16,), jnp.float32)
    # Linear weights stored pre-transposed: y = x @ W + b
    fc1_w = 0.05 * jax.random.normal(k_f1w, (input_size, input_size // 2),
                                     jnp.float32)
    fc1_b = 0.05 * jax.random.normal(k_f1b, (input_size // 2,), jnp.float32)
    fc2_w = 0.05 * jax.random.normal(k_f2w, (input_size // 2, 1), jnp.float32)
    fc2_b = 0.05 * jax.random.normal(k_f2b, (1,), jnp.float32)

    params = (w1, b1, w2, b2, fc1_w, fc1_b, fc2_w, fc2_b)

    # One-time weight preparation (hoisted out of the forward pass).
    prepared = jax.block_until_ready(prepare_params(params))

    fwd = jax.jit(mice_conv_forward)
    out = jax.block_until_ready(fwd(x, prepared))
    ref = jax.block_until_ready(ref_forward(x, params))

    assert out.shape == (B, 1), out.shape
    assert jnp.allclose(out, ref, rtol=1e-4, atol=1e-4), (out, ref)

    print("KERNEL_OK")
</pallas_src>

<mosaic_0001>
module attributes {stable_mosaic.version = 11 : i64} {
  func.func @fused_forward_kernel(%arg0: i32, %arg1: memref<1x16x16xf32, #tpu.memory_space<vmem>>, %arg2: memref<3x16x112xf32, #tpu.memory_space<vmem>>, %arg3: memref<1x112xf32, #tpu.memory_space<vmem>>, %arg4: memref<3x112x256xf32, #tpu.memory_space<vmem>>, %arg5: memref<1x256xf32, #tpu.memory_space<vmem>>, %arg6: memref<6x128x288xf32, #tpu.memory_space<vmem>>, %arg7: memref<1x288xf32, #tpu.memory_space<vmem>>, %arg8: memref<1x288xf32, #tpu.memory_space<vmem>>, %arg9: memref<1x1xf32, #tpu.memory_space<vmem>>, %arg10: memref<1x1x1xf32, #tpu.memory_space<vmem>>) attributes {dimension_semantics = [#tpu.dimension_semantics<parallel>], iteration_bounds = array<i64: 2>, scalar_prefetch = 0 : i64, scratch_operands = 0 : i64, tpu.core_type = #tpu.core_type<tc>, window_params = [{transform_indices = @transform_0, window_bounds = array<i64: 1, 16, 16>}, {pipeline_mode = #tpu.pipeline_mode<synchronous>, transform_indices = @transform_1, window_bounds = array<i64: 3, 16, 112>}, {pipeline_mode = #tpu.pipeline_mode<synchronous>, transform_indices = @transform_2, window_bounds = array<i64: 1, 112>}, {pipeline_mode = #tpu.pipeline_mode<synchronous>, transform_indices = @transform_3, window_bounds = array<i64: 3, 112, 256>}, {pipeline_mode = #tpu.pipeline_mode<synchronous>, transform_indices = @transform_4, window_bounds = array<i64: 1, 256>}, {pipeline_mode = #tpu.pipeline_mode<synchronous>, transform_indices = @transform_5, window_bounds = array<i64: 6, 128, 288>}, {pipeline_mode = #tpu.pipeline_mode<synchronous>, transform_indices = @transform_6, window_bounds = array<i64: 1, 288>}, {pipeline_mode = #tpu.pipeline_mode<synchronous>, transform_indices = @transform_7, window_bounds = array<i64: 1, 288>}, {pipeline_mode = #tpu.pipeline_mode<synchronous>, transform_indices = @transform_8, window_bounds = array<i64: 1, 1>}, {transform_indices = @transform_9, window_bounds = array<i64: 1, 1, 1>}]} {
    %c0 = arith.constant 0 : index
    %c0_0 = arith.constant 0 : index
    %c0_1 = arith.constant 0 : index
    %0 = vector.load %arg1[%c0, %c0_0, %c0_1] : memref<1x16x16xf32, #tpu.memory_space<vmem>>, vector<1x16x16xf32>
    %1 = vector.shape_cast %0 : vector<1x16x16xf32> to vector<16x16xf32>
    %2 = vector.extract_strided_slice %1 {offsets = [0, 0], sizes = [14, 16], strides = [1, 1]} : vector<16x16xf32> to vector<14x16xf32>
    %c0_2 = arith.constant 0 : index
    %c0_3 = arith.constant 0 : index
    %c0_4 = arith.constant 0 : index
    %3 = vector.load %arg2[%c0_2, %c0_3, %c0_4] : memref<3x16x112xf32, #tpu.memory_space<vmem>>, vector<1x16x112xf32>
    %4 = vector.shape_cast %3 : vector<1x16x112xf32> to vector<16x112xf32>
    %cst = arith.constant dense<0.000000e+00> : vector<14x112xf32>
    %5 = tpu.matmul %2, %4, %cst {dimension_numbers = #tpu.dot_dimension_numbers<[1], [0], [0], [1], [0, 0, 1, 1], [], []>} : vector<14x16xf32>, vector<16x112xf32>, vector<14x112xf32> -> vector<14x112xf32>
    %6 = vector.extract_strided_slice %1 {offsets = [1, 0], sizes = [14, 16], strides = [1, 1]} : vector<16x16xf32> to vector<14x16xf32>
    %c1 = arith.constant 1 : index
    %c0_5 = arith.constant 0 : index
    %c0_6 = arith.constant 0 : index
    %7 = vector.load %arg2[%c1, %c0_5, %c0_6] : memref<3x16x112xf32, #tpu.memory_space<vmem>>, vector<1x16x112xf32>
    %8 = vector.shape_cast %7 : vector<1x16x112xf32> to vector<16x112xf32>
    %cst_7 = arith.constant dense<0.000000e+00> : vector<14x112xf32>
    %9 = tpu.matmul %6, %8, %cst_7 {dimension_numbers = #tpu.dot_dimension_numbers<[1], [0], [0], [1], [0, 0, 1, 1], [], []>} : vector<14x16xf32>, vector<16x112xf32>, vector<14x112xf32> -> vector<14x112xf32>
    %10 = arith.addf %5, %9 : vector<14x112xf32>
    %11 = vector.extract_strided_slice %1 {offsets = [2, 0], sizes = [14, 16], strides = [1, 1]} : vector<16x16xf32> to vector<14x16xf32>
    %c2 = arith.constant 2 : index
    %c0_8 = arith.constant 0 : index
    %c0_9 = arith.constant 0 : index
    %12 = vector.load %arg2[%c2, %c0_8, %c0_9] : memref<3x16x112xf32, #tpu.memory_space<vmem>>, vector<1x16x112xf32>
    %13 = vector.shape_cast %12 : vector<1x16x112xf32> to vector<16x112xf32>
    %cst_10 = arith.constant dense<0.000000e+00> : vector<14x112xf32>
    %14 = tpu.matmul %11, %13, %cst_10 {dimension_numbers = #tpu.dot_dimension_numbers<[1], [0], [0], [1], [0, 0, 1, 1], [], []>} : vector<14x16xf32>, vector<16x112xf32>, vector<14x112xf32> -> vector<14x112xf32>
    %15 = arith.addf %10, %14 : vector<14x112xf32>
    %c0_11 = arith.constant 0 : index
    %c0_12 = arith.constant 0 : index
    %16 = vector.load %arg3[%c0_11, %c0_12] : memref<1x112xf32, #tpu.memory_space<vmem>>, vector<1x112xf32>
    %17 = vector.broadcast %16 : vector<1x112xf32> to vector<14x112xf32>
    %18 = arith.addf %15, %17 : vector<14x112xf32>
    %cst_13 = arith.constant 0.000000e+00 : f32
    %19 = vector.broadcast %cst_13 : f32 to vector<14x112xf32>
    %20 = arith.maximumf %18, %19 : vector<14x112xf32>
    %21 = vector.extract_strided_slice %20 {offsets = [0, 0], sizes = [12, 112], strides = [1, 1]} : vector<14x112xf32> to vector<12x112xf32>
    %c0_14 = arith.constant 0 : index
    %c0_15 = arith.constant 0 : index
    %c0_16 = arith.constant 0 : index
    %22 = vector.load %arg4[%c0_14, %c0_15, %c0_16] : memref<3x112x256xf32, #tpu.memory_space<vmem>>, vector<1x112x256xf32>
    %23 = vector.shape_cast %22 : vector<1x112x256xf32> to vector<112x256xf32>
    %cst_17 = arith.constant dense<0.000000e+00> : vector<12x256xf32>
    %24 = tpu.matmul %21, %23, %cst_17 {dimension_numbers = #tpu.dot_dimension_numbers<[1], [0], [0], [1], [0, 0, 1, 1], [], []>} : vector<12x112xf32>, vector<112x256xf32>, vector<12x256xf32> -> vector<12x256xf32>
    %25 = vector.extract_strided_slice %20 {offsets = [1, 0], sizes = [12, 112], strides = [1, 1]} : vector<14x112xf32> to vector<12x112xf32>
    %c1_18 = arith.constant 1 : index
    %c0_19 = arith.constant 0 : index
    %c0_20 = arith.constant 0 : index
    %26 = vector.load %arg4[%c1_18, %c0_19, %c0_20] : memref<3x112x256xf32, #tpu.memory_space<vmem>>, vector<1x112x256xf32>
    %27 = vector.shape_cast %26 : vector<1x112x256xf32> to vector<112x256xf32>
    %cst_21 = arith.constant dense<0.000000e+00> : vector<12x256xf32>
    %28 = tpu.matmul %25, %27, %cst_21 {dimension_numbers = #tpu.dot_dimension_numbers<[1], [0], [0], [1], [0, 0, 1, 1], [], []>} : vector<12x112xf32>, vector<112x256xf32>, vector<12x256xf32> -> vector<12x256xf32>
    %29 = arith.addf %24, %28 : vector<12x256xf32>
    %30 = vector.extract_strided_slice %20 {offsets = [2, 0], sizes = [12, 112], strides = [1, 1]} : vector<14x112xf32> to vector<12x112xf32>
    %c2_22 = arith.constant 2 : index
    %c0_23 = arith.constant 0 : index
    %c0_24 = arith.constant 0 : index
    %31 = vector.load %arg4[%c2_22, %c0_23, %c0_24] : memref<3x112x256xf32, #tpu.memory_space<vmem>>, vector<1x112x256xf32>
    %32 = vector.shape_cast %31 : vector<1x112x256xf32> to vector<112x256xf32>
    %cst_25 = arith.constant dense<0.000000e+00> : vector<12x256xf32>
    %33 = tpu.matmul %30, %32, %cst_25 {dimension_numbers = #tpu.dot_dimension_numbers<[1], [0], [0], [1], [0, 0, 1, 1], [], []>} : vector<12x112xf32>, vector<112x256xf32>, vector<12x256xf32> -> vector<12x256xf32>
    %34 = arith.addf %29, %33 : vector<12x256xf32>
    %c0_26 = arith.constant 0 : index
    %c0_27 = arith.constant 0 : index
    %35 = vector.load %arg5[%c0_26, %c0_27] : memref<1x256xf32, #tpu.memory_space<vmem>>, vector<1x256xf32>
    %36 = vector.broadcast %35 : vector<1x256xf32> to vector<12x256xf32>
    %37 = arith.addf %34, %36 : vector<12x256xf32>
    %cst_28 = arith.constant 0.000000e+00 : f32
    %38 = vector.broadcast %cst_28 : f32 to vector<12x256xf32>
    %39 = arith.maximumf %37, %38 : vector<12x256xf32>
    %40 = vector.extract_strided_slice %39 {offsets = [0, 0], sizes = [11, 256], strides = [1, 1]} : vector<12x256xf32> to vector<11x256xf32>
    %41 = vector.extract_strided_slice %39 {offsets = [1, 0], sizes = [11, 256], strides = [1, 1]} : vector<12x256xf32> to vector<11x256xf32>
    %42 = arith.maximumf %40, %41 : vector<11x256xf32>
    %43 = vector.extract_strided_slice %42 {offsets = [0, 0], sizes = [11, 128], strides = [1, 1]} : vector<11x256xf32> to vector<11x128xf32>
    %44 = vector.extract_strided_slice %42 {offsets = [0, 128], sizes = [11, 128], strides = [1, 1]} : vector<11x256xf32> to vector<11x128xf32>
    %45 = arith.maximumf %43, %44 : vector<11x128xf32>
    %c0_29 = arith.constant 0 : index
    %c0_30 = arith.constant 0 : index
    %46 = vector.load %arg7[%c0_29, %c0_30] : memref<1x288xf32, #tpu.memory_space<vmem>>, vector<1x288xf32>
    %47 = vector.extract_strided_slice %45 {offsets = [0, 0], sizes = [1, 128], strides = [1, 1]} : vector<11x128xf32> to vector<1x128xf32>
    %c0_31 = arith.constant 0 : index
    %c0_32 = arith.constant 0 : index
    %c0_33 = arith.constant 0 : index
    %48 = vector.load %arg6[%c0_31, %c0_32, %c0_33] : memref<6x128x288xf32, #tpu.memory_space<vmem>>, vector<1x128x288xf32>
    %49 = vector.shape_cast %48 : vector<1x128x288xf32> to vector<128x288xf32>
    %cst_34 = arith.constant dense<0.000000e+00> : vector<1x288xf32>
    %50 = tpu.matmul %47, %49, %cst_34 {dimension_numbers = #tpu.dot_dimension_numbers<[1], [0], [0], [1], [0, 0, 1, 1], [], []>} : vector<1x128xf32>, vector<128x288xf32>, vector<1x288xf32> -> vector<1x288xf32>
    %51 = arith.addf %46, %50 : vector<1x288xf32>
    %52 = vector.extract_strided_slice %45 {offsets = [2, 0], sizes = [1, 128], strides = [1, 1]} : vector<11x128xf32> to vector<1x128xf32>
    %c1_35 = arith.constant 1 : index
    %c0_36 = arith.constant 0 : index
    %c0_37 = arith.constant 0 : index
    %53 = vector.load %arg6[%c1_35, %c0_36, %c0_37] : memref<6x128x288xf32, #tpu.memory_space<vmem>>, vector<1x128x288xf32>
    %54 = vector.shape_cast %53 : vector<1x128x288xf32> to vector<128x288xf32>
    %cst_38 = arith.constant dense<0.000000e+00> : vector<1x288xf32>
    %55 = tpu.matmul %52, %54, %cst_38 {dimension_numbers = #tpu.dot_dimension_numbers<[1], [0], [0], [1], [0, 0, 1, 1], [], []>} : vector<1x128xf32>, vector<128x288xf32>, vector<1x288xf32> -> vector<1x288xf32>
    %56 = arith.addf %51, %55 : vector<1x288xf32>
    %57 = vector.extract_strided_slice %45 {offsets = [4, 0], sizes = [1, 128], strides = [1, 1]} : vector<11x128xf32> to vector<1x128xf32>
    %c2_39 = arith.constant 2 : index
    %c0_40 = arith.constant 0 : index
    %c0_41 = arith.constant 0 : index
    %58 = vector.load %arg6[%c2_39, %c0_40, %c0_41] : memref<6x128x288xf32, #tpu.memory_space<vmem>>, vector<1x128x288xf32>
    %59 = vector.shape_cast %58 : vector<1x128x288xf32> to vector<128x288xf32>
    %cst_42 = arith.constant dense<0.000000e+00> : vector<1x288xf32>
    %60 = tpu.matmul %57, %59, %cst_42 {dimension_numbers = #tpu.dot_dimension_numbers<[1], [0], [0], [1], [0, 0, 1, 1], [], []>} : vector<1x128xf32>, vector<128x288xf32>, vector<1x288xf32> -> vector<1x288xf32>
    %61 = arith.addf %56, %60 : vector<1x288xf32>
    %62 = vector.extract_strided_slice %45 {offsets = [6, 0], sizes = [1, 128], strides = [1, 1]} : vector<11x128xf32> to vector<1x128xf32>
    %c3 = arith.constant 3 : index
    %c0_43 = arith.constant 0 : index
    %c0_44 = arith.constant 0 : index
    %63 = vector.load %arg6[%c3, %c0_43, %c0_44] : memref<6x128x288xf32, #tpu.memory_space<vmem>>, vector<1x128x288xf32>
    %64 = vector.shape_cast %63 : vector<1x128x288xf32> to vector<128x288xf32>
    %cst_45 = arith.constant dense<0.000000e+00> : vector<1x288xf32>
    %65 = tpu.matmul %62, %64, %cst_45 {dimension_numbers = #tpu.dot_dimension_numbers<[1], [0], [0], [1], [0, 0, 1, 1], [], []>} : vector<1x128xf32>, vector<128x288xf32>, vector<1x288xf32> -> vector<1x288xf32>
    %66 = arith.addf %61, %65 : vector<1x288xf32>
    %67 = vector.extract_strided_slice %45 {offsets = [8, 0], sizes = [1, 128], strides = [1, 1]} : vector<11x128xf32> to vector<1x128xf32>
    %c4 = arith.constant 4 : index
    %c0_46 = arith.constant 0 : index
    %c0_47 = arith.constant 0 : index
    %68 = vector.load %arg6[%c4, %c0_46, %c0_47] : memref<6x128x288xf32, #tpu.memory_space<vmem>>, vector<1x128x288xf32>
    %69 = vector.shape_cast %68 : vector<1x128x288xf32> to vector<128x288xf32>
    %cst_48 = arith.constant dense<0.000000e+00> : vector<1x288xf32>
    %70 = tpu.matmul %67, %69, %cst_48 {dimension_numbers = #tpu.dot_dimension_numbers<[1], [0], [0], [1], [0, 0, 1, 1], [], []>} : vector<1x128xf32>, vector<128x288xf32>, vector<1x288xf32> -> vector<1x288xf32>
    %71 = arith.addf %66, %70 : vector<1x288xf32>
    %72 = vector.extract_strided_slice %45 {offsets = [10, 0], sizes = [1, 128], strides = [1, 1]} : vector<11x128xf32> to vector<1x128xf32>
    %c5 = arith.constant 5 : index
    %c0_49 = arith.constant 0 : index
    %c0_50 = arith.constant 0 : index
    %73 = vector.load %arg6[%c5, %c0_49, %c0_50] : memref<6x128x288xf32, #tpu.memory_space<vmem>>, vector<1x128x288xf32>
    %74 = vector.shape_cast %73 : vector<1x128x288xf32> to vector<128x288xf32>
    %cst_51 = arith.constant dense<0.000000e+00> : vector<1x288xf32>
    %75 = tpu.matmul %72, %74, %cst_51 {dimension_numbers = #tpu.dot_dimension_numbers<[1], [0], [0], [1], [0, 0, 1, 1], [], []>} : vector<1x128xf32>, vector<128x288xf32>, vector<1x288xf32> -> vector<1x288xf32>
    %76 = arith.addf %71, %75 : vector<1x288xf32>
    %cst_52 = arith.constant 0.000000e+00 : f32
    %77 = vector.broadcast %cst_52 : f32 to vector<1x288xf32>
    %78 = arith.maximumf %76, %77 : vector<1x288xf32>
    %c0_53 = arith.constant 0 : index
    %c0_54 = arith.constant 0 : index
    %79 = vector.load %arg8[%c0_53, %c0_54] : memref<1x288xf32, #tpu.memory_space<vmem>>, vector<1x288xf32>
    %80 = arith.mulf %78, %79 : vector<1x288xf32>
    %cst_55 = arith.constant dense<0.000000e+00> : vector<1xf32>
    %81 = vector.multi_reduction <add>, %80, %cst_55 [1] : vector<1x288xf32> to vector<1xf32>
    %82 = vector.shape_cast %81 : vector<1xf32> to vector<1x1xf32>
    %c0_56 = arith.constant 0 : index
    %c0_57 = arith.constant 0 : index
    %83 = vector.load %arg9[%c0_56, %c0_57] : memref<1x1xf32, #tpu.memory_space<vmem>>, vector<1x1xf32>
    %84 = arith.addf %82, %83 : vector<1x1xf32>
    %c0_58 = arith.constant 0 : index
    %c0_59 = arith.constant 0 : index
    %c0_60 = arith.constant 0 : index
    %85 = vector.load %arg10[%c0_58, %c0_59, %c0_60] : memref<1x1x1xf32, #tpu.memory_space<vmem>>, vector<1x1x1xf32>
    %86 = vector.shape_cast %85 : vector<1x1x1xf32> to vector<1x1xf32>
    %87 = vector.shape_cast %84 : vector<1x1xf32> to vector<1x1x1xf32>
    tpu.vector_store %arg10[%c0_58, %c0_59, %c0_60], %87 {strides = array<i32>} : memref<1x1x1xf32, #tpu.memory_space<vmem>>, vector<1x1x1xf32>,
    return
  }
  func.func @transform_0(%arg0: i32) -> (i32, i32, i32) {
    %c0_i32 = arith.constant 0 : i32
    %c0_i32_0 = arith.constant 0 : i32
    %c0_i32_1 = arith.constant 0 : i32
    return %arg0, %c0_i32, %c0_i32_0 : i32, i32, i32
  }
  func.func @transform_1(%arg0: i32) -> (i32, i32, i32) {
    %c0_i32 = arith.constant 0 : i32
    %c0_i32_0 = arith.constant 0 : i32
    %c0_i32_1 = arith.constant 0 : i32
    %c0_i32_2 = arith.constant 0 : i32
    return %c0_i32, %c0_i32_0, %c0_i32_1 : i32, i32, i32
  }
  func.func @transform_2(%arg0: i32) -> (i32, i32) {
    %c0_i32 = arith.constant 0 : i32
    %c0_i32_0 = arith.constant 0 : i32
    %c0_i32_1 = arith.constant 0 : i32
    return %c0_i32, %c0_i32_0 : i32, i32
  }
  func.func @transform_3(%arg0: i32) -> (i32, i32, i32) {
    %c0_i32 = arith.constant 0 : i32
    %c0_i32_0 = arith.constant 0 : i32
    %c0_i32_1 = arith.constant 0 : i32
    %c0_i32_2 = arith.constant 0 : i32
    return %c0_i32, %c0_i32_0, %c0_i32_1 : i32, i32, i32
  }
  func.func @transform_4(%arg0: i32) -> (i32, i32) {
    %c0_i32 = arith.constant 0 : i32
    %c0_i32_0 = arith.constant 0 : i32
    %c0_i32_1 = arith.constant 0 : i32
    return %c0_i32, %c0_i32_0 : i32, i32
  }
  func.func @transform_5(%arg0: i32) -> (i32, i32, i32) {
    %c0_i32 = arith.constant 0 : i32
    %c0_i32_0 = arith.constant 0 : i32
    %c0_i32_1 = arith.constant 0 : i32
    %c0_i32_2 = arith.constant 0 : i32
    return %c0_i32, %c0_i32_0, %c0_i32_1 : i32, i32, i32
  }
  func.func @transform_6(%arg0: i32) -> (i32, i32) {
    %c0_i32 = arith.constant 0 : i32
    %c0_i32_0 = arith.constant 0 : i32
    %c0_i32_1 = arith.constant 0 : i32
    return %c0_i32, %c0_i32_0 : i32, i32
  }
  func.func @transform_7(%arg0: i32) -> (i32, i32) {
    %c0_i32 = arith.constant 0 : i32
    %c0_i32_0 = arith.constant 0 : i32
    %c0_i32_1 = arith.constant 0 : i32
    return %c0_i32, %c0_i32_0 : i32, i32
  }
  func.func @transform_8(%arg0: i32) -> (i32, i32) {
    %c0_i32 = arith.constant 0 : i32
    %c0_i32_0 = arith.constant 0 : i32
    %c0_i32_1 = arith.constant 0 : i32
    return %c0_i32, %c0_i32_0 : i32, i32
  }
  func.func @transform_9(%arg0: i32) -> (i32, i32, i32) {
    %c0_i32 = arith.constant 0 : i32
    %c0_i32_0 = arith.constant 0 : i32
    %c0_i32_1 = arith.constant 0 : i32
    return %arg0, %c0_i32, %c0_i32_0 : i32, i32, i32
  }
}

</mosaic_0001>

<bundles_post_ra>
// kernel: mice_conv_forward.1
= control target key start
LH: loop header
LB: loop body
LE: loop exit
PB: predicated region body
PF: predicated region fallthrough
CT: control target
= control target key end

     0   :  { %s3570_s11 = smov 0   ;;  %s4886_s0 = inlined_call_operand.vmem [shape: f32[2,16,16], index: 0, kind: input, shape index: {}]   ;;  %s4887_s1 = inlined_call_operand.vmem [shape: f32[3,16,112], index: 1, kind: input, shape index: {}]   ;;  %s4888_s2 = inlined_call_operand.vmem [shape: f32[1,112], index: 2, kind: input, shape index: {}]   ;;  %s4889_s3 = inlined_call_operand.vmem [shape: f32[3,112,256], index: 3, kind: input, shape index: {}]   ;;  %s4890_s4 = inlined_call_operand.vmem [shape: f32[1,256], index: 4, kind: input, shape index: {}]   ;;  %s4891_s5 = inlined_call_operand.vmem [shape: f32[6,128,288], index: 5, kind: input, shape index: {}]   ;;  %s4892_s6 = inlined_call_operand.vmem [shape: f32[1,288], index: 6, kind: input, shape index: {}]   ;;  %s4893_s7 = inlined_call_operand.vmem [shape: f32[1,288], index: 7, kind: input, shape index: {}]   ;;  %s4894_s8 = inlined_call_operand.<no memory space> [shape: f32[1,1], index: 8, kind: input, shape index: {}]   ;;  %s4895_s9 = inlined_call_operand.vmem [shape: f32[2,1,1], index: 9, kind: output, shape index: {}]  }
   0x1   :  { %v14_v0 = vstv %s4894_s8 }
   0x2   :  { %15 = vst [vmem:[#allocation2] sm:$0x1] %v14_v0 }
   0x3 LB: > { %s2381_s12 = sadd.s32 4294967295, %s3511_s11   ;;  %p2385_p0 = scmp.ge.s32.totalorder %s3511_s11, 1  ;;  %s3511_s11 = sphi %s3570_s11, %s21_s11  }
   0x4   : > { %p289_p1 = scmp.lt.s32.totalorder %s3511_s11, 3 }
   0x6   : > { %p290_p2 = pnand %p2385_p0, %p289_p1 }
   0x7   : > { %v2388_v1 = vld [vmem:[%s4887_s1 + $0x10] sm:$0xff] (!%p290_p2)  ;;  %v2389_v2 = vld [vmem:[%s4887_s1 + $0x18] sm:$0xff] (!%p290_p2)  ;;  %p323_p3 = scmp.lt.s32.totalorder (!%p290_p2), %s2381_s12, 1  ;;  %v333_v3 = vld [vmem:[%s4887_s1] sm:$0xff] (!%p290_p2)  ;;  %vm340_vm0 = vcmask (!%p290_p2), 1046528   ;;  %vm344_vm1 = vcmask (!%p290_p2), 130048  }
   0x8   : > { %293 = sbr.rel (%p290_p2) target bundleno = 1114 (0x45a), region = 56  ;;  %v3049_v4 = vpack.c.bf16 (!%p290_p2), %v2389_v2, %v2388_v1  ;;  %v334_v5 = vld [vmem:[%s4887_s1 + $0x8] sm:$0xff] (!%p290_p2)  ;;  %v2402_v8 = vld [vmem:[%s4889_s3 + $0xf8] sm:$0xff] (!%p290_p2)  ;;  %v2399_v9 = vld [vmem:[%s4889_s3 + $0xe0] sm:$0xff] (!%p290_p2)  ;;  %vm506_vm2 = vcmask (!%p290_p2), 1045504   ;;  %v3513_v63 = vmov (!%p290_p2), 0.0  }
   0x9   : > { %v3053_v6 = vpack.c.bf16 (!%p290_p2), %v334_v5, %v333_v3  ;;  %v2400_v7 = vld [vmem:[%s4889_s3 + $0xe8] sm:$0xff] (!%p290_p2)  ;;  %v2401_v11 = vld [vmem:[%s4889_s3 + $0xf0] sm:$0xff] (!%p290_p2)  ;;  %v2406_v13 = vld [vmem:[%s4889_s3 + $0x118] sm:$0xff] (!%p290_p2)  ;;  %733 = vmatprep.mubr.f32.mxu1 (!%p290_p2), %v3513_v63  ;;  %vm664_vm3 = vcmask (!%p290_p2), 916480   ;;  %vm3515_vm4 = vmmov (!%p290_p2), 0   ;;  %vm2321_vm5 = vcmask (!%p290_p2), 1040384  }
   0xa   : > { %3050 = vmatprep.subr.bf16.mxu0 (!%p290_p2), %v3049_v4  ;;  %v3061_v10 = vpack.c.bf16 (!%p290_p2), %v2402_v8, %v2400_v7  ;;  %v2404_v12 = vld [vmem:[%s4889_s3 + $0x108] sm:$0xff] (!%p290_p2)  ;;  %v3063_v14 = vpack.c.bf16 (!%p290_p2), %v2401_v11, %v2399_v9  ;;  %v2403_v16 = vld [vmem:[%s4889_s3 + $0x100] sm:$0xff] (!%p290_p2)  ;;  %v2405_v17 = vld [vmem:[%s4889_s3 + $0x110] sm:$0xff] (!%p290_p2)  ;;  %vm2325_vm6 = vcmask (!%p290_p2), 253952   ;;  %vm2332_vm7 = vcmask (!%p290_p2), 0  }
   0xb   : > { %3052 = vmatpush3.bf16.msra.mxu0 (!%p290_p2), %v3049_v4  ;;  %v3065_v15 = vpack.c.bf16 (!%p290_p2), %v2406_v13, %v2404_v12  ;;  %v2408_v18 = vld [vmem:[%s4889_s3 + $0x128] sm:$0xff] (!%p290_p2)  ;;  %v2394_v19 = vld [vmem:[%s4887_s1 + $0x20] sm:$0xff] (!%p290_p2)  ;;  %v2410_v20 = vld [vmem:[%s4889_s3 + $0x138] sm:$0xff] (!%p290_p2)  ;;  %v3067_v24 = vpack.c.bf16 (!%p290_p2), %v2405_v17, %v2403_v16 }
   0xc   : > { %3054 = vmatprep.subr.bf16.mxu0 (!%p290_p2), %v3053_v6  ;;  %3062 = vmatprep.subr.bf16.mxu1 (!%p290_p2), %v3061_v10  ;;  %v2395_v23 = vld [vmem:[%s4887_s1 + $0x28] sm:$0xff] (!%p290_p2)  ;;  %v3069_v27 = vpack.c.bf16 (!%p290_p2), %v2410_v20, %v2408_v18  ;;  %v2407_v28 = vld [vmem:[%s4889_s3 + $0x120] sm:$0xff] (!%p290_p2)  ;;  %v2409_v29 = vld [vmem:[%s4889_s3 + $0x130] sm:$0xff] (!%p290_p2) }
   0xd   : > { %3064 = vmatpush1.bf16.msra.mxu1 (!%p290_p2), %v3063_v14  ;;  %v2412_v30 = vld [vmem:[%s4889_s3 + $0x148] sm:$0xff] (!%p290_p2)  ;;  %v2414_v31 = vld [vmem:[%s4889_s3 + $0x158] sm:$0xff] (!%p290_p2)  ;;  %v3057_v33 = vpack.c.bf16 (!%p290_p2), %v2395_v23, %v2394_v19  ;;  %v3071_v34 = vpack.c.bf16 (!%p290_p2), %v2409_v29, %v2407_v28  ;;  %v2411_v36 = vld [vmem:[%s4889_s3 + $0x140] sm:$0xff] (!%p290_p2) }
   0xe   : > { %3066 = vmatprep.subr.bf16.mxu1 (!%p290_p2), %v3065_v15  ;;  %v3073_v35 = vpack.c.bf16 (!%p290_p2), %v2414_v31, %v2412_v30  ;;  %v2413_v37 = vld [vmem:[%s4889_s3 + $0x150] sm:$0xff] (!%p290_p2)  ;;  %v2416_v38 = vld [vmem:[%s4889_s3 + $0x168] sm:$0xff] (!%p290_p2)  ;;  %v2418_v39 = vld [vmem:[%s4889_s3 + $0x178] sm:$0xff] (!%p290_p2) }
   0xf   : > { %s4897_s12 = smov (!%p323_p3, %s2381_s12), 1  ;;  %v3075_v42 = vpack.c.bf16 %v2413_v37, %v2411_v36  ;;  %v3077_v43 = vpack.c.bf16 %v2418_v39, %v2416_v38  ;;  %v2415_v44 = vld [vmem:[%s4889_s3 + $0x160] sm:$0xff]  ;;  %v2417_v45 = vld [vmem:[%s4889_s3 + $0x170] sm:$0xff]  ;;  %v2420_v48 = vld [vmem:[%s4889_s3 + $0x188] sm:$0xff] }
  0x10   : > { %s2703_s13 = sshll.u32 %s4897_s12, 4  ;;  %v3079_v47 = vpack.c.bf16 %v2417_v45, %v2415_v44  ;;  %v2422_v49 = vld [vmem:[%s4889_s3 + $0x198] sm:$0xff]  ;;  %v2419_v51 = vld [vmem:[%s4889_s3 + $0x180] sm:$0xff]  ;;  %v2421_v52 = vld [vmem:[%s4889_s3 + $0x190] sm:$0xff]  ;;  %s330_s22 = scalar_lea.vmem %s4895_s9, %s4897_s12 }
  0x11   : > { %s327_s21 = scalar_lea.vmem %s4886_s0, %s2703_s13  ;;  %3068 = vmatpush1.bf16.msra.mxu1 %v3067_v24  ;;  %v3081_v50 = vpack.c.bf16 %v2422_v49, %v2420_v48  ;;  %v3083_v53 = vpack.c.bf16 %v2421_v52, %v2419_v51  ;;  %v2424_v54 = vld [vmem:[%s4889_s3 + $0x1a8] sm:$0xff]  ;;  %v2426_v55 = vld [vmem:[%s4889_s3 + $0x1b8] sm:$0xff]  ;;  %v2423_v57 = vld [vmem:[%s4889_s3 + $0x1a0] sm:$0xff] }
  0x12   : > { %v331_v21 = vld [vmem:[%s327_s21] sm:$0xff]  ;;  %v332_v22 = vld [vmem:[%s327_s21 + $0x8] sm:$0xff]  ;;  %3070 = vmatprep.subr.bf16.mxu1 %v3069_v27  ;;  %v3085_v56 = vpack.c.bf16 %v2426_v55, %v2424_v54  ;;  %v2425_v58 = vld [vmem:[%s4889_s3 + $0x1b0] sm:$0xff] }
  0x13   : > { %v341_v25 = vrot.slane %v331_v21, 1  ;;  %v342_v26 = vrot.slane %v332_v22, 1  ;;  %v507_v40 = vrot.slane %v331_v21, 2  ;;  %v508_v41 = vrot.slane %v332_v22, 2  ;;  %v603_v60 = vld [vmem:[%s4889_s3 + $0x8] sm:$0xff]  ;;  %v605_v61 = vld [vmem:[%s4889_s3 + $0x18] sm:$0xff] }
  0x14   : > { %v3087_v59 = vpack.c.bf16 %v2425_v58, %v2423_v57  ;;  %v3089_v62 = vpack.c.bf16 %v605_v61, %v603_v60  ;;  %v986_v0 = vld [vmem:[%s4891_s5 + $0x8] sm:$0xff]  ;;  %v989_v1 = vld [vmem:[%s4891_s5 + $0x20] sm:$0xff]  ;;  %v988_v4 = vld [vmem:[%s4891_s5 + $0x18] sm:$0xff] }
  0x15   : > { %v343_v32 = vsel %vm340_vm0, %v341_v25, %v342_v26  ;;  %3072 = vmatpush1.bf16.msra.mxu1 %v3071_v34  ;;  %v509_v46 = vsel %vm506_vm2, %v507_v40, %v508_v41  ;;  %v985_v2 = vld [vmem:[%s4891_s5] sm:$0xff]  ;;  %v3145_v3 = vpack.c.bf16 %v989_v1, %v986_v0  ;;  %v995_v7 = vld [vmem:[%s4891_s5 + $0x50] sm:$0xff]  ;;  %v994_v10 = vld [vmem:[%s4891_s5 + $0x48] sm:$0xff] }
  0x16   : > { %2822 = vmatprep.mubr.msk.f32.mxu0 %vm344_vm1, %v343_v32  ;;  %3074 = vmatprep.subr.bf16.mxu1 %v3073_v35  ;;  %v3147_v5 = vpack.c.bf16 %v988_v4, %v985_v2  ;;  %v991_v8 = vld [vmem:[%s4891_s5 + $0x30] sm:$0xff]  ;;  %v998_v12 = vld [vmem:[%s4891_s5 + $0x68] sm:$0xff]  ;;  %v1001_v13 = vld [vmem:[%s4891_s5 + $0x80] sm:$0xff] }
  0x17   : > { %2823 = vmatmul.mubr.msk.f32.vlgmr.msra.gmra.mrb[0].mxu0 %vm344_vm1, %v342_v26  ;;  %v3151_v11 = vpack.c.bf16 %v994_v10, %v991_v8  ;;  %v3153_v14 = vpack.c.bf16 %v1001_v13, %v998_v12  ;;  %v997_v15 = vld [vmem:[%s4891_s5 + $0x60] sm:$0xff]  ;;  %v1000_v16 = vld [vmem:[%s4891_s5 + $0x78] sm:$0xff]  ;;  %v1007_v18 = vld [vmem:[%s4891_s5 + $0xb0] sm:$0xff] }
  0x18   : > { %3056 = vmatpush3.bf16.msra.mxu0 %v3053_v6  ;;  %2829 = vmatprep.mubr.msk.f32.mxu0 %vm344_vm1, %v331_v21  ;;  %v992_v6 = vld [vmem:[%s4891_s5 + $0x38] sm:$0xff]  ;;  %v3155_v19 = vpack.c.bf16 %v1000_v16, %v997_v15  ;;  %v1003_v21 = vld [vmem:[%s4891_s5 + $0x90] sm:$0xff]  ;;  %v2398_v24 = vld [vmem:[%s4888_s2] ss:$0 sm:$0xff] }
  0x19   : > { %3058 = vmatprep.subr.bf16.mxu0 %v3057_v33  ;;  %3076 = vmatpush1.bf16.msra.mxu1 %v3075_v42  ;;  %v3149_v9 = vpack.c.bf16 %v995_v7, %v992_v6  ;;  %v1004_v17 = vld [vmem:[%s4891_s5 + $0x98] sm:$0xff]  ;;  %v602_v30 = vld [vmem:[%s4889_s3] sm:$0xff]  ;;  %v604_v31 = vld [vmem:[%s4889_s3 + $0x10] sm:$0xff] }
  0x1a   : > { %3078 = vmatprep.subr.bf16.mxu1 %v3077_v43  ;;  %v3157_v20 = vpack.c.bf16 %v1007_v18, %v1004_v17  ;;  %v609_v34 = vld [vmem:[%s4889_s3 + $0x38] sm:$0xff]  ;;  %v3091_v39 = vpack.c.bf16 %v604_v31, %v602_v30  ;;  %v608_v42 = vld [vmem:[%s4889_s3 + $0x30] sm:$0xff]  ;;  %v611_v44 = vld [vmem:[%s4889_s3 + $0x48] sm:$0xff] }
  0x1b   : > { %v613_v45 = vld [vmem:[%s4889_s3 + $0x58] sm:$0xff]  ;;  %v610_v49 = vld [vmem:[%s4889_s3 + $0x40] sm:$0xff]  ;;  %v615_v51 = vld [vmem:[%s4889_s3 + $0x68] sm:$0xff] }
  0x1c   : > { %v3097_v48 = vpack.c.bf16 %v613_v45, %v611_v44  ;;  %v617_v52 = vld [vmem:[%s4889_s3 + $0x78] sm:$0xff]  ;;  %v614_v55 = vld [vmem:[%s4889_s3 + $0x60] sm:$0xff]  ;;  %v619_v57 = vld [vmem:[%s4889_s3 + $0x88] sm:$0xff] }
  0x1d   : > { %3080 = vmatpush1.bf16.msra.mxu1 %v3079_v47  ;;  %v3101_v54 = vpack.c.bf16 %v617_v52, %v615_v51  ;;  %v621_v58 = vld [vmem:[%s4889_s3 + $0x98] sm:$0xff]  ;;  %v618_v61 = vld [vmem:[%s4889_s3 + $0x80] sm:$0xff]  ;;  %v623_v0 = vld [vmem:[%s4889_s3 + $0xa8] sm:$0xff] }
  0x1e   : > { %3082 = vmatprep.subr.bf16.mxu1 %v3081_v50  ;;  %v612_v50 = vld [vmem:[%s4889_s3 + $0x50] sm:$0xff]  ;;  %v3105_v60 = vpack.c.bf16 %v621_v58, %v619_v57  ;;  %v625_v1 = vld [vmem:[%s4889_s3 + $0xb8] sm:$0xff]  ;;  %v622_v4 = vld [vmem:[%s4889_s3 + $0xa0] sm:$0xff] }
  0x1f   : > { %2830 = vmatmul.mubr.msk.f32.vlgmr.msra.gmra.mrb[0].mxu0 %vm344_vm1, %v332_v22  ;;  %v1006_v22 = vld [vmem:[%s4891_s5 + $0xa8] sm:$0xff]  ;;  %v629_v7 = vld [vmem:[%s4889_s3 + $0xd8] sm:$0xff]  ;;  %v626_v10 = vld [vmem:[%s4889_s3 + $0xc0] sm:$0xff] }
  0x20   : > { %3060 = vmatpush3.bf16.msra.mxu0 %v3057_v33  ;;  %2836 = vmatprep.mubr.msk.f32.mxu0 %vm344_vm1, %v509_v46  ;;  %v3159_v23 = vpack.c.bf16 %v1006_v22, %v1003_v21  ;;  %v607_v33 = vld [vmem:[%s4889_s3 + $0x28] sm:$0xff]  ;;  %v2434_v13 = vld [vmem:[%s4889_s3 + $0x1d8] sm:$0xff]  ;;  %v2431_v16 = vld [vmem:[%s4889_s3 + $0x1c0] sm:$0xff] }
  0x21   : > { %3084 = vmatpush1.bf16.msra.mxu1 %v3083_v53  ;;  %3146 = vmatprep.subr.bf16.mxu0 %v3145_v3  ;;  %v3093_v40 = vpack.c.bf16 %v609_v34, %v607_v33  ;;  %v3099_v53 = vpack.c.bf16 %v612_v50, %v610_v49  ;;  %v3109_v3 = vpack.c.bf16 %v625_v1, %v623_v0  ;;  %v627_v6 = vld [vmem:[%s4889_s3 + $0xc8] sm:$0xff]  ;;  %v2433_v17 = vld [vmem:[%s4889_s3 + $0x1d0] sm:$0xff]  ;;  %v2435_v22 = vld [vmem:[%s4889_s3 + $0x1e0] sm:$0xff] }
  0x22   : > { %3086 = vmatprep.subr.bf16.mxu1 %v3085_v56  ;;  %v616_v56 = vld [vmem:[%s4889_s3 + $0x70] sm:$0xff]  ;;  %v2432_v12 = vld [vmem:[%s4889_s3 + $0x1c8] sm:$0xff]  ;;  %v2454_v45 = vld [vmem:[%s4889_s3 + $0x278] sm:$0xff] }
  0x23   : > { %v3117_v15 = vpack.c.bf16 %v2434_v13, %v2432_v12  ;;  %v2436_v18 = vld [vmem:[%s4889_s3 + $0x1e8] sm:$0xff]  ;;  %v2441_v30 = vld [vmem:[%s4889_s3 + $0x210] sm:$0xff]  ;;  %v2451_v49 = vld [vmem:[%s4889_s3 + $0x260] sm:$0xff] }
  0x24   : > { %v2444_v31 = vld [vmem:[%s4889_s3 + $0x228] sm:$0xff]  ;;  %v2453_v50 = vld [vmem:[%s4889_s3 + $0x270] sm:$0xff]  ;;  %v2458_v52 = vld [vmem:[%s4889_s3 + $0x298] sm:$0xff] }
  0x25   : > { %3088 = vmatpush1.bf16.msra.mxu1 %v3087_v59  ;;  %v3103_v59 = vpack.c.bf16 %v616_v56, %v614_v55  ;;  %v2452_v44 = vld [vmem:[%s4889_s3 + $0x268] sm:$0xff]  ;;  %v2455_v55 = vld [vmem:[%s4889_s3 + $0x280] sm:$0xff]  ;;  %v2457_v56 = vld [vmem:[%s4889_s3 + $0x290] sm:$0xff] }
  0x26   : > { %3090 = vmatprep.subr.bf16.mxu1 %v3089_v62  ;;  %v620_v62 = vld [vmem:[%s4889_s3 + $0x90] sm:$0xff]  ;;  %v2456_v51 = vld [vmem:[%s4889_s3 + $0x288] sm:$0xff]  ;;  %v3143_v57 = vpack.c.bf16 %v2457_v56, %v2455_v55  ;;  %v2472_v0 = vld [vmem:[%s4891_s5 + $0x1d8] sm:$0xff] }
  0x27   : > { %2837 = vmatmul.mubr.msk.f32.vlgmr.msra.gmra.mrb[0].mxu0 %vm344_vm1, %v508_v41  ;;  %v606_v41 = vld [vmem:[%s4889_s3 + $0x20] sm:$0xff]  ;;  %v3107_v2 = vpack.c.bf16 %v620_v62, %v618_v61  ;;  %v2463_v58 = vld [vmem:[%s4891_s5 + $0x190] sm:$0xff]  ;;  %v3514_v61 = vmov 0.0|0.0   ;;  %v2490_v12 = vld [vmem:[%s4891_s5 + $0x268] sm:$0xff] }
  0x28   : > { %1097 = vmatprep.mubr.f32.mxu0 %v3513_v63  ;;  %3148 = vmatpush1.bf16.msra.mxu0 %v3147_v5  ;;  %v3095_v47 = vpack.c.bf16 %v608_v42, %v606_v41  ;;  %v624_v5 = vld [vmem:[%s4889_s3 + $0xb0] sm:$0xff]  ;;  %v2447_v42 = vld [vmem:[%s4889_s3 + $0x240] sm:$0xff] }
  0x29   : > { %3150 = vmatprep.subr.bf16.mxu0 %v3149_v9  ;;  %v3111_v8 = vpack.c.bf16 %v624_v5, %v622_v4  ;;  %v3113_v9 = vpack.c.bf16 %v629_v7, %v627_v6  ;;  %v2469_v62 = vld [vmem:[%s4891_s5 + $0x1c0] sm:$0xff]  ;;  %v2484_v5 = vld [vmem:[%s4891_s5 + $0x238] sm:$0xff] }
  0x2a   : > { %v3237_v1 = vpack.c.bf16 %v2472_v0, %v2469_v62  ;;  %v2481_v4 = vld [vmem:[%s4891_s5 + $0x220] sm:$0xff] }
  0x2b   : > { %v3243_v6 = vpack.c.bf16 %v2484_v5, %v2481_v4 }
  0x2c   : > { %3152 = vmatpush1.bf16.msra.mxu0 %v3151_v11  ;;  %v628_v11 = vld [vmem:[%s4889_s3 + $0xd0] sm:$0xff] }
  0x2d   : > { %3154 = vmatprep.subr.bf16.mxu0 %v3153_v14  ;;  %v3115_v14 = vpack.c.bf16 %v628_v11, %v626_v10  ;;  %v2487_v11 = vld [vmem:[%s4891_s5 + $0x250] sm:$0xff] }
  0x2e   : > { %v3246_v13 = vpack.c.bf16 %v2490_v12, %v2487_v11  ;;  %v2514_v11 = vld [vmem:[%s4891_s5 + $0x328] sm:$0xff] }
  0x30   : > { %3156 = vmatpush1.bf16.msra.mxu0 %v3155_v19  ;;  %v2438_v19 = vld [vmem:[%s4889_s3 + $0x1f8] sm:$0xff] }
  0x31   : > { %3158 = vmatprep.subr.bf16.mxu0 %v3157_v20  ;;  %v3119_v20 = vpack.c.bf16 %v2433_v17, %v2431_v16  ;;  %v3121_v21 = vpack.c.bf16 %v2438_v19, %v2436_v18  ;;  %v1015_v17 = vld [vmem:[%s4891_s5 + $0xf0] sm:$0xff]  ;;  %v1018_v18 = vld [vmem:[%s4891_s5 + $0x108] sm:$0xff] }
  0x32   : > { %v3167_v19 = vpack.c.bf16 %v1018_v18, %v1015_v17 }
  0x34   : > { %3160 = vmatpush1.bf16.msra.mxu0 %v3159_v23  ;;  %v2437_v23 = vld [vmem:[%s4889_s3 + $0x1f0] sm:$0xff] }
  0xfa   : > { %v2838_v25 = vpop.f32.mrb[0].mxu0 }
  0xfb   : > { %v599_v26 = vadd.f32 %v2838_v25, %v2398_v24  ;;  %v580_v27 = vpop.f32.mrb[1].mxu0  ;;  %v2442_v25 = vld [vmem:[%s4889_s3 + $0x218] sm:$0xff] }
  0xfc   : > { %v598_v28 = vadd.f32 %v2398_v24, %v580_v27  ;;  %v2440_v24 = vld [vmem:[%s4889_s3 + $0x208] sm:$0xff] }
  0xfd   : > { %v3753_v29 = vmax.f32 %v599_v26, 0.0  ;;  %v3123_v26 = vpack.c.bf16 %v2437_v23, %v2435_v22  ;;  %v3125_v27 = vpack.c.bf16 %v2442_v25, %v2440_v24  ;;  %v1022_v23 = vld [vmem:[%s4891_s5 + $0x128] sm:$0xff]  ;;  %v1025_v24 = vld [vmem:[%s4891_s5 + $0x140] sm:$0xff] }
  0xfe   : > { %v3761_v32 = vmax.f32 %v598_v28, 0.0  ;;  %v2439_v28 = vld [vmem:[%s4889_s3 + $0x200] sm:$0xff]  ;;  %v3169_v25 = vpack.c.bf16 %v1025_v24, %v1022_v23  ;;  %v1002_v23 = vld [vmem:[%s4891_s5 + $0x88] sm:$0xff] }
  0xff   : > { %v662_v35 = vrot.slane %v3753_v29, 1  ;;  %v857_v36 = vrot.slane %v3753_v29, 2  ;;  %v3127_v33 = vpack.c.bf16 %v2441_v30, %v2439_v28  ;;  %v2499_v30 = vld [vmem:[%s4891_s5 + $0x2b0] sm:$0xff] }
 0x100   : > { %v661_v37 = vrot.slane %v3761_v32, 1  ;;  %v856_v38 = vrot.slane %v3761_v32, 2 }
 0x102   : > { %v663_v43 = vsel %vm340_vm0, %v661_v37, %v662_v35  ;;  %v3789_v46 = vsel %vm506_vm2, %v856_v38, %v857_v36  ;;  %v2445_v37 = vld [vmem:[%s4889_s3 + $0x230] sm:$0xff]  ;;  %v2448_v38 = vld [vmem:[%s4889_s3 + $0x248] sm:$0xff] }
 0x103   : > { %2427 = vmatmul.mubr.msk.f32.vlgmr.msra.gmra.mrb[0].mxu1 %vm664_vm3, %v663_v43  ;;  %v2449_v43 = vld [vmem:[%s4889_s3 + $0x250] sm:$0xff] }
 0x104   : > { %3092 = vmatpush1.bf16.msra.mxu1 %v3091_v39  ;;  %739 = vmatprep.mubr.f32.mxu1 %v3513_v63  ;;  %v2450_v39 = vld [vmem:[%s4889_s3 + $0x258] sm:$0xff] }
 0x105   : > { %3094 = vmatprep.subr.bf16.mxu1 %v3093_v40  ;;  %v3133_v41 = vpack.c.bf16 %v2450_v39, %v2448_v38  ;;  %v1030_v38 = vld [vmem:[%s4891_s5 + $0x168] sm:$0xff] }
 0x107   : > { %2428 = vmatmul.mubr.msk.f32.gmra.mrb[2].mxu1 %vm664_vm3, %v662_v35  ;;  %v2443_v35 = vld [vmem:[%s4889_s3 + $0x220] sm:$0xff] }
 0x108   : > { %3096 = vmatpush1.bf16.msra.mxu1 %v3095_v47  ;;  %814 = vmatprep.mubr.f32.mxu1 %v3513_v63  ;;  %v3131_v40 = vpack.c.bf16 %v2445_v37, %v2443_v35  ;;  %v3135_v47 = vpack.c.bf16 %v2449_v43, %v2447_v42  ;;  %v1027_v37 = vld [vmem:[%s4891_s5 + $0x150] sm:$0xff]  ;;  %v946_v43 = vlaneseq }
 0x109   : > { %3098 = vmatprep.subr.bf16.mxu1 %v3097_v48  ;;  %v3137_v48 = vpack.c.bf16 %v2454_v45, %v2452_v44  ;;  %v3175_v39 = vpack.c.bf16 %v1030_v38, %v1027_v37  ;;  %v1014_v37 = vld [vmem:[%s4891_s5 + $0xe8] sm:$0xff] }
 0x10a   : > { %v4053_v44 = vshrl.u32 %v946_v43, 7  ;;  %v1020_v43 = vld [vmem:[%s4891_s5 + $0x118] sm:$0xff] }
 0x10c   : > { %3100 = vmatpush1.bf16.msra.mxu1 %v3099_v53  ;;  %v3139_v53 = vpack.c.bf16 %v2453_v50, %v2451_v49  ;;  %v948_v45 = vsub.s32 0, %v4053_v44 }
 0x10d   : > { %3102 = vmatprep.subr.bf16.mxu1 %v3101_v54  ;;  %v3141_v54 = vpack.c.bf16 %v2458_v52, %v2456_v51 }
 0x110   : > { %3104 = vmatpush1.bf16.msra.mxu1 %v3103_v59  ;;  %v2466_v59 = vld [vmem:[%s4891_s5 + $0x1a8] sm:$0xff] }
 0x111   : > { %3106 = vmatprep.subr.bf16.mxu1 %v3105_v60  ;;  %v3234_v60 = vpack.c.bf16 %v2466_v59, %v2463_v58 }
 0x114   : > { %3108 = vmatpush1.bf16.msra.mxu1 %v3107_v2  ;;  %v2475_v2 = vld [vmem:[%s4891_s5 + $0x1f0] sm:$0xff] }
 0x115   : > { %3110 = vmatprep.subr.bf16.mxu1 %v3109_v3  ;;  %v2478_v3 = vld [vmem:[%s4891_s5 + $0x208] sm:$0xff] }
 0x118   : > { %3112 = vmatpush1.bf16.msra.mxu1 %v3111_v8  ;;  %v1009_v8 = vld [vmem:[%s4891_s5 + $0xc0] sm:$0xff] }
 0x119   : > { %3114 = vmatprep.subr.bf16.mxu1 %v3113_v9  ;;  %v1012_v9 = vld [vmem:[%s4891_s5 + $0xd8] sm:$0xff] }
 0x11a   : > { %v3163_v10 = vpack.c.bf16 %v1012_v9, %v1009_v8 }
 0x11c   : > { %3116 = vmatpush1.bf16.msra.mxu1 %v3115_v14  ;;  %v1016_v14 = vld [vmem:[%s4891_s5 + $0xf8] sm:$0xff] }
 0x11d   : > { %3118 = vmatprep.subr.bf16.mxu1 %v3117_v15  ;;  %v1019_v15 = vld [vmem:[%s4891_s5 + $0x110] sm:$0xff] }
 0x11e   : > { %v3165_v16 = vpack.c.bf16 %v1019_v15, %v1016_v14  ;;  %v993_v15 = vld [vmem:[%s4891_s5 + $0x40] sm:$0xff] }
 0x11f   : > { %2429 = vmatmul.mubr.msk.f32.vlgmr.msra.gmra.mrb[0].mxu1 %vm664_vm3, %v3761_v32  ;;  %v2446_v32 = vld [vmem:[%s4889_s3 + $0x238] sm:$0xff] }
 0x120   : > { %3120 = vmatpush1.bf16.msra.mxu1 %v3119_v20  ;;  %820 = vmatprep.mubr.f32.mxu1 %v3513_v63  ;;  %v3129_v34 = vpack.c.bf16 %v2446_v32, %v2444_v31  ;;  %v2493_v20 = vld [vmem:[%s4891_s5 + $0x280] sm:$0xff]  ;;  %v2502_v31 = vld [vmem:[%s4891_s5 + $0x2c8] sm:$0xff] }
 0x121   : > { %3122 = vmatprep.subr.bf16.mxu1 %v3121_v21  ;;  %v2496_v21 = vld [vmem:[%s4891_s5 + $0x298] sm:$0xff]  ;;  %v3252_v32 = vpack.c.bf16 %v2502_v31, %v2499_v30 }
 0x122   : > { %v3249_v22 = vpack.c.bf16 %v2496_v21, %v2493_v20  ;;  %v2520_v20 = vld [vmem:[%s4891_s5 + $0x358] sm:$0xff] }
 0x123   : > { %2430 = vmatmul.mubr.msk.f32.gmra.mrb[2].mxu1 %vm664_vm3, %v3753_v29  ;;  %v1010_v29 = vld [vmem:[%s4891_s5 + $0xc8] sm:$0xff]  ;;  %v1008_v30 = vld [vmem:[%s4891_s5 + $0xb8] sm:$0xff] }
 0x124   : > { %3124 = vmatpush1.bf16.msra.mxu1 %v3123_v26  ;;  %927 = vmatprep.mubr.f32.mxu1 %v3513_v63  ;;  %v1021_v26 = vld [vmem:[%s4891_s5 + $0x120] sm:$0xff] }
 0x125   : > { %3126 = vmatprep.subr.bf16.mxu1 %v3125_v27  ;;  %v1024_v27 = vld [vmem:[%s4891_s5 + $0x138] sm:$0xff] }
 0x126   : > { %v3171_v28 = vpack.c.bf16 %v1024_v27, %v1021_v26  ;;  %v2526_v26 = vld [vmem:[%s4891_s5 + $0x388] sm:$0xff] }
 0x128   : > { %3128 = vmatpush1.bf16.msra.mxu1 %v3127_v33  ;;  %v1028_v33 = vld [vmem:[%s4891_s5 + $0x158] sm:$0xff] }
 0x129   : > { %3130 = vmatprep.subr.bf16.mxu1 %v3129_v34  ;;  %v1031_v34 = vld [vmem:[%s4891_s5 + $0x170] sm:$0xff] }
 0x12a   : > { %v3173_v35 = vpack.c.bf16 %v1031_v34, %v1028_v33  ;;  %v2532_v33 = vld [vmem:[%s4891_s5 + $0x3b8] sm:$0xff] }
 0x12c   : > { %3132 = vmatpush1.bf16.msra.mxu1 %v3131_v40  ;;  %v2505_v40 = vld [vmem:[%s4891_s5 + $0x2e0] sm:$0xff] }
 0x12d   : > { %3134 = vmatprep.subr.bf16.mxu1 %v3133_v41  ;;  %v2508_v41 = vld [vmem:[%s4891_s5 + $0x2f8] sm:$0xff] }
 0x12e   : > { %v3255_v42 = vpack.c.bf16 %v2508_v41, %v2505_v40  ;;  %v2538_v40 = vld [vmem:[%s4891_s5 + $0x3e8] sm:$0xff] }
 0x130   : > { %3136 = vmatpush1.bf16.msra.mxu1 %v3135_v47  ;;  %v944_v47 = vld [vmem:[%s4890_s4] sm:$0x3] }
 0x131   : > { %3138 = vmatprep.subr.bf16.mxu1 %v3137_v48  ;;  %v952_v48 = vsub.s32 1, %v4053_v44  ;;  %v949_v49 = vrot.slane %v944_v47, %v948_v45 }
 0x133   : > { %v953_v50 = vrot.slane %v944_v47, %v952_v48 }
 0x134   : > { %3140 = vmatpush1.bf16.msra.mxu1 %v3139_v53 }
 0x135   : > { %3142 = vmatprep.subr.bf16.mxu1 %v3141_v54 }
 0x138   : > { %3144 = vmatpush1.bf16.msra.mxu1 %v3143_v57 }
 0x139   : > { %3233 = vmatprep.subr.bf16.mxu1 %v3514_v61 }
 0x13b   : > { %2459 = vmatmul.mubr.msk.f32.vlgmr.msra.gmra.mrb[0].mxu1 %vm664_vm3, %v3789_v46  ;;  %v3240_v46 = vpack.c.bf16 %v2478_v3, %v2475_v2 }
 0x13c   : > { %933 = vmatprep.mubr.f32.mxu1 %v3513_v63  ;;  %3235 = vmatpush3.bf16.msra.mxu1 %v3234_v60 }
 0x13d   : > { %3236 = vmatprep.subr.bf16.mxu1 %v3514_v61 }
 0x13f   : > { %2460 = vmatmul.mubr.msk.f32.gmra.mrb[2].mxu1 %vm664_vm3, %v857_v36  ;;  %v1013_v36 = vld [vmem:[%s4891_s5 + $0xe0] sm:$0xff] }
 0x140   : > { %3238 = vmatpush3.bf16.msra.mxu1 %v3237_v1  ;;  %v3161_v7 = vpack.c.bf16 %v1013_v36, %v1010_v29  ;;  %2906 = vmatprep.mubr.msk.f32.mxu1 %vm3515_vm4, %v3513_v63  ;;  %v990_v29 = vld [vmem:[%s4891_s5 + $0x28] sm:$0xff] }
 0x141   : > { %3239 = vmatprep.subr.bf16.mxu1 %v3514_v61 }
 0x142   : > { %3162 = vmatprep.subr.bf16.mxu0 %v3161_v7 }
 0x143   : > { %3164 = vmatpush1.bf16.msra.mxu0 %v3163_v10  ;;  %v2511_v10 = vld [vmem:[%s4891_s5 + $0x310] sm:$0xff] }
 0x144   : > { %3241 = vmatpush3.bf16.msra.mxu1 %v3240_v46  ;;  %3166 = vmatprep.subr.bf16.mxu0 %v3165_v16  ;;  %v996_v16 = vld [vmem:[%s4891_s5 + $0x58] sm:$0xff]  ;;  %v3290_v17 = vpack.c.bf16 %v2514_v11, %v2511_v10  ;;  %v2467_v11 = vld [vmem:[%s4891_s5 + $0x1b0] sm:$0xff] }
 0x145   : > { %3242 = vmatprep.subr.bf16.mxu1 %v3514_v61  ;;  %v3181_v21 = vpack.c.bf16 %v996_v16, %v993_v15  ;;  %v2474_v16 = vld [vmem:[%s4891_s5 + $0x1e8] sm:$0xff] }
 0x147   : > { %3168 = vmatpush1.bf16.msra.mxu0 %v3167_v19  ;;  %v2517_v19 = vld [vmem:[%s4891_s5 + $0x340] sm:$0xff] }
 0x148   : > { %3244 = vmatpush3.bf16.msra.mxu1 %v3243_v6  ;;  %3170 = vmatprep.subr.bf16.mxu0 %v3169_v25  ;;  %v987_v6 = vld [vmem:[%s4891_s5 + $0x10] sm:$0xff]  ;;  %v3293_v24 = vpack.c.bf16 %v2520_v20, %v2517_v19  ;;  %v2565_v20 = vld [vmem:[%s4891_s5 + $0x4c0] sm:$0xff] }
 0x149   : > { %3245 = vmatprep.subr.bf16.mxu1 %v3514_v61  ;;  %v2523_v25 = vld [vmem:[%s4891_s5 + $0x370] sm:$0xff] }
 0x14a   : > { %v3296_v31 = vpack.c.bf16 %v2526_v26, %v2523_v25  ;;  %v2476_v25 = vld [vmem:[%s4891_s5 + $0x1f8] sm:$0xff] }
 0x14b   : > { %3172 = vmatpush1.bf16.msra.mxu0 %v3171_v28  ;;  %v1005_v28 = vld [vmem:[%s4891_s5 + $0xa0] sm:$0xff] }
 0x14c   : > { %3247 = vmatpush3.bf16.msra.mxu1 %v3246_v13  ;;  %3174 = vmatprep.subr.bf16.mxu0 %v3173_v35  ;;  %v3178_v13 = vpack.c.bf16 %v990_v29, %v987_v6  ;;  %v3187_v34 = vpack.c.bf16 %v1008_v30, %v1005_v28  ;;  %v1011_v35 = vld [vmem:[%s4891_s5 + $0xd0] sm:$0xff]  ;;  %v2468_v29 = vld [vmem:[%s4891_s5 + $0x1b8] sm:$0xff] }
 0x14d   : > { %3248 = vmatprep.subr.bf16.mxu1 %v3514_v61  ;;  %v3190_v41 = vpack.c.bf16 %v1014_v37, %v1011_v35  ;;  %v2483_v28 = vld [vmem:[%s4891_s5 + $0x230] sm:$0xff]  ;;  %v2482_v35 = vld [vmem:[%s4891_s5 + $0x228] sm:$0xff] }
 0x14e   : > { %v2571_v30 = vld [vmem:[%s4891_s5 + $0x4f0] sm:$0xff] }
 0x14f   : > { %3176 = vmatpush1.bf16.msra.mxu0 %v3175_v39  ;;  %v2535_v39 = vld [vmem:[%s4891_s5 + $0x3d0] sm:$0xff] }
 0x150   : > { %3250 = vmatpush3.bf16.msra.mxu1 %v3249_v22  ;;  %3177 = vmatprep.subr.bf16.mxu0 %v3514_v61  ;;  %v999_v22 = vld [vmem:[%s4891_s5 + $0x70] sm:$0xff]  ;;  %v3302_v47 = vpack.c.bf16 %v2538_v40, %v2535_v39  ;;  %v2489_v39 = vld [vmem:[%s4891_s5 + $0x260] sm:$0xff] }
 0x151   : > { %3251 = vmatprep.subr.bf16.mxu1 %v3514_v61  ;;  %v3184_v27 = vpack.c.bf16 %v1002_v23, %v999_v22  ;;  %v2577_v40 = vld [vmem:[%s4891_s5 + $0x520] sm:$0xff] }
 0x154   : > { %3253 = vmatpush3.bf16.msra.mxu1 %v3252_v32  ;;  %v2529_v32 = vld [vmem:[%s4891_s5 + $0x3a0] sm:$0xff] }
 0x155   : > { %3254 = vmatprep.subr.bf16.mxu1 %v3514_v61  ;;  %v3299_v38 = vpack.c.bf16 %v2532_v33, %v2529_v32 }
 0x158   : > { %3256 = vmatpush3.bf16.msra.mxu1 %v3255_v42  ;;  %v1017_v42 = vld [vmem:[%s4891_s5 + $0x100] sm:$0xff] }
 0x159   : > { %3289 = vmatprep.subr.bf16.mxu1 %v3514_v61 }
 0x20e   : > { %v929_v51 = vpop.f32.mrb[0].mxu1 }
 0x20f   : > { %v956_v52 = vadd.f32 %v949_v49, %v929_v51  ;;  %v931_v53 = vpop.f32.mrb[1].mxu1  ;;  %v3193_v51 = vpack.c.bf16 %v1020_v43, %v1017_v42 }
 0x210   : > { %v957_v54 = vadd.f32 %v953_v50, %v931_v53  ;;  %v1026_v53 = vld [vmem:[%s4891_s5 + $0x148] sm:$0xff] }
 0x211   : > { %v960_v56 = vmax.f32 %v956_v52, 0.0  ;;  %v1023_v52 = vld [vmem:[%s4891_s5 + $0x130] sm:$0xff] }
 0x212   : > { %v935_v55 = vpop.f32.mrb[2].mxu1  ;;  %v961_v59 = vmax.f32 %v957_v54, 0.0 }
 0x213   : > { %v958_v57 = vadd.f32 %v949_v49, %v935_v55  ;;  %v937_v58 = vpop.f32.mrb[3].mxu1  ;;  %v968_v1 = vrot.slane %v960_v56, 1  ;;  %v2541_v49 = vld [vmem:[%s4891_s5 + $0x400] sm:$0xff]  ;;  %v2547_v55 = vld [vmem:[%s4891_s5 + $0x430] sm:$0xff] }
 0x214   : > { %v959_v60 = vadd.f32 %v953_v50, %v937_v58  ;;  %v971_v3 = vrot.slane %v961_v59, 1  ;;  %v2544_v50 = vld [vmem:[%s4891_s5 + $0x418] sm:$0xff]  ;;  %v1029_v58 = vld [vmem:[%s4891_s5 + $0x160] sm:$0xff] }
 0x215   : > { %v962_v62 = vmax.f32 %v958_v57, 0.0  ;;  %v3305_v54 = vpack.c.bf16 %v2544_v50, %v2541_v49  ;;  %v3196_v57 = vpack.c.bf16 %v1026_v53, %v1023_v52  ;;  %v2488_v49 = vld [vmem:[%s4891_s5 + $0x258] sm:$0xff]  ;;  %v2495_v52 = vld [vmem:[%s4891_s5 + $0x290] sm:$0xff] }
 0x216   : > { %v963_v0 = vmax.f32 %v959_v60, 0.0  ;;  %v2583_v53 = vld [vmem:[%s4891_s5 + $0x550] sm:$0xff] }
 0x217   : > { %v969_v2 = vrot.slane %v962_v62, 1 }
 0x218   : > { %v972_v46 = vrot.slane %v963_v0, 1 }
 0x219   : > { %v970_v4 = vsel %vm340_vm0, %v968_v1, %v969_v2  ;;  %v980_v5 = vmax.f32 %v962_v62, %v969_v2  ;;  %v2462_v62 = vld [vmem:[%s4891_s5 + $0x188] sm:$0xff]  ;;  %v2553_v1 = vld [vmem:[%s4891_s5 + $0x460] sm:$0xff]  ;;  %v2556_v2 = vld [vmem:[%s4891_s5 + $0x478] sm:$0xff] }
 0x21a   : > { %v978_v36 = vmax.f32 %v960_v56, %v970_v4  ;;  %v973_v7 = vsel %vm340_vm0, %v971_v3, %v972_v46  ;;  %v981_v8 = vmax.f32 %v963_v0, %v972_v46  ;;  %v2550_v56 = vld [vmem:[%s4891_s5 + $0x448] sm:$0xff]  ;;  %v2465_v0 = vld [vmem:[%s4891_s5 + $0x1a0] sm:$0xff]  ;;  %v3311_v6 = vpack.c.bf16 %v2556_v2, %v2553_v1  ;;  %v2592_v1 = vld [vmem:[%s4891_s5 + $0x598] sm:$0xff] }
 0x21b   : > { %v979_v9 = vmax.f32 %v961_v59, %v973_v7  ;;  %v1032_v59 = vld [vmem:[%s4891_s5 + $0x178] sm:$0xff]  ;;  %v3308_v60 = vpack.c.bf16 %v2550_v56, %v2547_v55  ;;  %v3201_v46 = vpack.c.bf16 %v2465_v0, %v2462_v62  ;;  %v2461_v4 = vld [vmem:[%s4891_s5 + $0x180] sm:$0xff]  ;;  %v2559_v7 = vld [vmem:[%s4891_s5 + $0x490] sm:$0xff] }
 0x21c   : > { %v4078_v12 = vmax.f32 %v980_v5, %v981_v8  ;;  %v3199_v3 = vpack.c.bf16 %v1032_v59, %v1029_v58  ;;  %v2464_v5 = vld [vmem:[%s4891_s5 + $0x198] sm:$0xff]  ;;  %v2562_v8 = vld [vmem:[%s4891_s5 + $0x4a8] sm:$0xff]  ;;  %v2501_v62 = vld [vmem:[%s4891_s5 + $0x2c0] sm:$0xff] }
 0x21d   : > { %v4080_v14 = vmax.f32 %v978_v36, %v979_v9  ;;  %v2471_v36 = vld [vmem:[%s4891_s5 + $0x1d0] sm:$0xff]  ;;  %v3203_v9 = vpack.c.bf16 %v2464_v5, %v2461_v4  ;;  %v3346_v15 = vpack.c.bf16 %v2562_v8, %v2559_v7  ;;  %v2494_v58 = vld [vmem:[%s4891_s5 + $0x288] sm:$0xff]  ;;  %v2589_v0 = vld [vmem:[%s4891_s5 + $0x580] sm:$0xff] }
 0x21e   : > { %v3205_v10 = vpack.c.bf16 %v2471_v36, %v2468_v29  ;;  %v2500_v4 = vld [vmem:[%s4891_s5 + $0x2b8] sm:$0xff]  ;;  %v3361_v5 = vpack.c.bf16 %v2592_v1, %v2589_v0  ;;  %v2507_v29 = vld [vmem:[%s4891_s5 + $0x2f0] sm:$0xff]  ;;  %v2598_v7 = vld [vmem:[%s4891_s5 + $0x5c8] sm:$0xff] }
 0x21f   : > { %1098 = vmatmul.mubr.f32.vlgmr.msra.gmra.mrb[2].mxu0 %v4080_v14  ;;  %v1252_v18 = vrot.slane %v4080_v14, 2  ;;  %v1472_v19 = vrot.slane %v4080_v14, 4  ;;  %v2595_v36 = vld [vmem:[%s4891_s5 + $0x5b0] sm:$0xff]  ;;  %v2628_v0 = vld [vmem:[%s4891_s5 + $0x6b8] sm:$0xff] }
 0x220   : > { %3179 = vmatpush3.bf16.msra.mxu0 %v3178_v13  ;;  %2871 = vmatprep.mubr.msk.f32.mxu0 %vm3515_vm4, %v3513_v63  ;;  %v2470_v13 = vld [vmem:[%s4891_s5 + $0x1c8] sm:$0xff] }
 0x221   : > { %2907 = vmatmul.mubr.f32.vlgmr.msra.gmra.mrb[4].mxu1 %v1252_v18  ;;  %3180 = vmatprep.subr.bf16.mxu0 %v3514_v61  ;;  %v3207_v22 = vpack.c.bf16 %v2470_v13, %v2467_v11  ;;  %v2506_v11 = vld [vmem:[%s4891_s5 + $0x2e8] sm:$0xff]  ;;  %v3364_v13 = vpack.c.bf16 %v2598_v7, %v2595_v36 }
 0x222   : > { %3291 = vmatpush3.bf16.msra.mxu1 %v3290_v17  ;;  %2941 = vmatprep.mubr.msk.f32.mxu1 %vm3515_vm4, %v3513_v63  ;;  %v2477_v17 = vld [vmem:[%s4891_s5 + $0x200] sm:$0xff]  ;;  %v2634_v36 = vld [vmem:[%s4891_s5 + $0x6e8] sm:$0xff] }
 0x223   : > { %3292 = vmatprep.subr.bf16.mxu1 %v3514_v61  ;;  %v3209_v23 = vpack.c.bf16 %v2477_v17, %v2474_v16  ;;  %v2513_v16 = vld [vmem:[%s4891_s5 + $0x320] sm:$0xff] }
 0x224   : > { %3182 = vmatpush3.bf16.msra.mxu0 %v3181_v21  ;;  %v2568_v21 = vld [vmem:[%s4891_s5 + $0x4d8] sm:$0xff]  ;;  %v2601_v17 = vld [vmem:[%s4891_s5 + $0x5e0] sm:$0xff] }
 0x225   : > { %3183 = vmatprep.subr.bf16.mxu0 %v3514_v61  ;;  %v3349_v26 = vpack.c.bf16 %v2568_v21, %v2565_v20  ;;  %v2604_v20 = vld [vmem:[%s4891_s5 + $0x5f8] sm:$0xff] }
 0x226   : > { %3294 = vmatpush3.bf16.msra.mxu1 %v3293_v24  ;;  %v2473_v24 = vld [vmem:[%s4891_s5 + $0x1e0] sm:$0xff] }
 0x227   : > { %3295 = vmatprep.subr.bf16.mxu1 %v3514_v61  ;;  %v3211_v32 = vpack.c.bf16 %v2476_v25, %v2473_v24  ;;  %v2512_v24 = vld [vmem:[%s4891_s5 + $0x318] sm:$0xff]  ;;  %v3367_v25 = vpack.c.bf16 %v2604_v20, %v2601_v17 }
 0x228   : > { %3185 = vmatpush3.bf16.msra.mxu0 %v3184_v27  ;;  %v2480_v27 = vld [vmem:[%s4891_s5 + $0x218] sm:$0xff] }
 0x229   : > { %3186 = vmatprep.subr.bf16.mxu0 %v3514_v61  ;;  %v3213_v33 = vpack.c.bf16 %v2483_v28, %v2480_v27  ;;  %v2519_v27 = vld [vmem:[%s4891_s5 + $0x350] sm:$0xff]  ;;  %v2640_v17 = vld [vmem:[%s4891_s5 + $0x718] sm:$0xff] }
 0x22a   : > { %3297 = vmatpush3.bf16.msra.mxu1 %v3296_v31  ;;  %v2574_v31 = vld [vmem:[%s4891_s5 + $0x508] sm:$0xff]  ;;  %v2607_v28 = vld [vmem:[%s4891_s5 + $0x610] sm:$0xff] }
 0x22b   : > { %3298 = vmatprep.subr.bf16.mxu1 %v3514_v61  ;;  %v3352_v37 = vpack.c.bf16 %v2574_v31, %v2571_v30  ;;  %v2610_v30 = vld [vmem:[%s4891_s5 + $0x628] sm:$0xff] }
 0x22c   : > { %3188 = vmatpush3.bf16.msra.mxu0 %v3187_v34  ;;  %v2479_v34 = vld [vmem:[%s4891_s5 + $0x210] sm:$0xff] }
 0x22d   : > { %3189 = vmatprep.subr.bf16.mxu0 %v3514_v61  ;;  %v3215_v42 = vpack.c.bf16 %v2482_v35, %v2479_v34  ;;  %v2518_v34 = vld [vmem:[%s4891_s5 + $0x348] sm:$0xff]  ;;  %v3402_v35 = vpack.c.bf16 %v2610_v30, %v2607_v28 }
 0x22e   : > { %3300 = vmatpush3.bf16.msra.mxu1 %v3299_v38  ;;  %v2486_v38 = vld [vmem:[%s4891_s5 + $0x248] sm:$0xff] }
 0x22f   : > { %3301 = vmatprep.subr.bf16.mxu1 %v3514_v61  ;;  %v3217_v43 = vpack.c.bf16 %v2489_v39, %v2486_v38  ;;  %v2525_v38 = vld [vmem:[%s4891_s5 + $0x380] sm:$0xff]  ;;  %v1692_v39 = vrot.slane %v4080_v14, 6  ;;  %v2646_v28 = vld [vmem:[%s4891_s5 + $0x748] sm:$0xff] }
 0x230   : > { %3191 = vmatpush3.bf16.msra.mxu0 %v3190_v41  ;;  %v2580_v41 = vld [vmem:[%s4891_s5 + $0x538] sm:$0xff] }
 0x231   : > { %3192 = vmatprep.subr.bf16.mxu0 %v3514_v61  ;;  %v3355_v50 = vpack.c.bf16 %v2580_v41, %v2577_v40  ;;  %v2613_v40 = vld [vmem:[%s4891_s5 + $0x640] sm:$0xff]  ;;  %v2616_v41 = vld [vmem:[%s4891_s5 + $0x658] sm:$0xff] }
 0x232   : > { %3303 = vmatpush3.bf16.msra.mxu1 %v3302_v47  ;;  %v2485_v47 = vld [vmem:[%s4891_s5 + $0x240] sm:$0xff] }
 0x233   : > { %3304 = vmatprep.subr.bf16.mxu1 %v3514_v61  ;;  %v3219_v55 = vpack.c.bf16 %v2488_v49, %v2485_v47  ;;  %v2524_v47 = vld [vmem:[%s4891_s5 + $0x378] sm:$0xff]  ;;  %v3405_v49 = vpack.c.bf16 %v2616_v41, %v2613_v40 }
 0x234   : > { %3194 = vmatpush3.bf16.msra.mxu0 %v3193_v51  ;;  %v2492_v51 = vld [vmem:[%s4891_s5 + $0x278] sm:$0xff] }
 0x235   : > { %3195 = vmatprep.subr.bf16.mxu0 %v3514_v61  ;;  %v3221_v56 = vpack.c.bf16 %v2495_v52, %v2492_v51  ;;  %v2531_v51 = vld [vmem:[%s4891_s5 + $0x3b0] sm:$0xff]  ;;  %v2652_v40 = vld [vmem:[%s4891_s5 + $0x778] sm:$0xff] }
 0x236   : > { %3306 = vmatpush3.bf16.msra.mxu1 %v3305_v54  ;;  %v2586_v54 = vld [vmem:[%s4891_s5 + $0x568] sm:$0xff]  ;;  %v2619_v52 = vld [vmem:[%s4891_s5 + $0x670] sm:$0xff] }
 0x237   : > { %3307 = vmatprep.subr.bf16.mxu1 %v3514_v61  ;;  %v3358_v59 = vpack.c.bf16 %v2586_v54, %v2583_v53  ;;  %v2622_v53 = vld [vmem:[%s4891_s5 + $0x688] sm:$0xff] }
 0x238   : > { %3197 = vmatpush3.bf16.msra.mxu0 %v3196_v57  ;;  %v2491_v57 = vld [vmem:[%s4891_s5 + $0x270] sm:$0xff] }
 0x239   : > { %3198 = vmatprep.subr.bf16.mxu0 %v3514_v61  ;;  %v3223_v2 = vpack.c.bf16 %v2494_v58, %v2491_v57  ;;  %v2530_v57 = vld [vmem:[%s4891_s5 + $0x3a8] sm:$0xff]  ;;  %v3408_v58 = vpack.c.bf16 %v2622_v53, %v2619_v52 }
 0x23a   : > { %3309 = vmatpush3.bf16.msra.mxu1 %v3308_v60  ;;  %v2498_v60 = vld [vmem:[%s4891_s5 + $0x2a8] sm:$0xff] }
 0x23b   : > { %3310 = vmatprep.subr.bf16.mxu1 %v3514_v61  ;;  %v2658_v52 = vld [vmem:[%s4891_s5 + $0x7a8] sm:$0xff] }
 0x23c   : > { %3200 = vmatpush3.bf16.msra.mxu0 %v3199_v3  ;;  %v3225_v3 = vpack.c.bf16 %v2501_v62, %v2498_v60  ;;  %v2537_v60 = vld [vmem:[%s4891_s5 + $0x3e0] sm:$0xff] }
 0x23d   : > { %3202 = vmatprep.subr.bf16.mxu0 %v3201_v46  ;;  %v2497_v46 = vld [vmem:[%s4891_s5 + $0x2a0] sm:$0xff] }
 0x23e   : > { %3312 = vmatpush3.bf16.msra.mxu1 %v3311_v6  ;;  %v2504_v6 = vld [vmem:[%s4891_s5 + $0x2d8] sm:$0xff]  ;;  %v3227_v8 = vpack.c.bf16 %v2500_v4, %v2497_v46  ;;  %v2625_v62 = vld [vmem:[%s4891_s5 + $0x6a0] sm:$0xff] }
 0x23f   : > { %2872 = vmatmul.mubr.f32.vlgmr.msra.gmra.mrb[4].mxu0 %v4080_v14  ;;  %3345 = vmatprep.subr.bf16.mxu1 %v3514_v61  ;;  %v2536_v46 = vld [vmem:[%s4891_s5 + $0x3d8] sm:$0xff]  ;;  %v3411_v4 = vpack.c.bf16 %v2628_v0, %v2625_v62 }
 0x240   : > { %3204 = vmatpush1.bf16.msra.mxu0 %v3203_v9  ;;  %1318 = vmatprep.mubr.f32.mxu0 %v3513_v63  ;;  %v3229_v9 = vpack.c.bf16 %v2507_v29, %v2504_v6  ;;  %v2543_v6 = vld [vmem:[%s4891_s5 + $0x410] sm:$0xff]  ;;  %v2664_v62 = vld [vmem:[%s4891_s5 + $0x7d8] sm:$0xff] }
 0x241   : > { %2942 = vmatmul.mubr.f32.vlgmr.msra.gmra.mrb[6].mxu1 %v1472_v19  ;;  %3206 = vmatprep.subr.bf16.mxu0 %v3205_v10  ;;  %v2503_v10 = vld [vmem:[%s4891_s5 + $0x2d0] sm:$0xff]  ;;  %v2620_v14 = vld [vmem:[%s4891_s5 + $0x678] sm:$0xff] }
 0x242   : > { %3347 = vmatpush3.bf16.msra.mxu1 %v3346_v15  ;;  %2976 = vmatprep.mubr.msk.f32.mxu1 %vm3515_vm4, %v3513_v63  ;;  %v2510_v15 = vld [vmem:[%s4891_s5 + $0x308] sm:$0xff]  ;;  %v3231_v21 = vpack.c.bf16 %v2506_v11, %v2503_v10  ;;  %v2631_v29 = vld [vmem:[%s4891_s5 + $0x6d0] sm:$0xff] }
 0x243   : > { %3348 = vmatprep.subr.bf16.mxu1 %v3514_v61  ;;  %v2542_v10 = vld [vmem:[%s4891_s5 + $0x408] sm:$0xff]  ;;  %v3414_v11 = vpack.c.bf16 %v2634_v36, %v2631_v29 }
 0x244   : > { %3208 = vmatpush1.bf16.msra.mxu0 %v3207_v22  ;;  %v3257_v22 = vpack.c.bf16 %v2513_v16, %v2510_v15  ;;  %v2549_v15 = vld [vmem:[%s4891_s5 + $0x440] sm:$0xff] }
 0x245   : > { %3210 = vmatprep.subr.bf16.mxu0 %v3209_v23  ;;  %v2509_v23 = vld [vmem:[%s4891_s5 + $0x300] sm:$0xff] }
 0x246   : > { %3350 = vmatpush3.bf16.msra.mxu1 %v3349_v26  ;;  %v2516_v26 = vld [vmem:[%s4891_s5 + $0x338] sm:$0xff]  ;;  %v3259_v31 = vpack.c.bf16 %v2512_v24, %v2509_v23  ;;  %v2637_v16 = vld [vmem:[%s4891_s5 + $0x700] sm:$0xff] }
 0x247   : > { %3351 = vmatprep.subr.bf16.mxu1 %v3514_v61  ;;  %v2548_v23 = vld [vmem:[%s4891_s5 + $0x438] sm:$0xff]  ;;  %v3417_v24 = vpack.c.bf16 %v2640_v17, %v2637_v16 }
 0x248   : > { %3212 = vmatpush1.bf16.msra.mxu0 %v3211_v32  ;;  %v3261_v32 = vpack.c.bf16 %v2519_v27, %v2516_v26  ;;  %v2555_v26 = vld [vmem:[%s4891_s5 + $0x470] sm:$0xff] }
 0x249   : > { %3214 = vmatprep.subr.bf16.mxu0 %v3213_v33  ;;  %v2515_v33 = vld [vmem:[%s4891_s5 + $0x330] sm:$0xff] }
 0x24a   : > { %3353 = vmatpush3.bf16.msra.mxu1 %v3352_v37  ;;  %v2522_v37 = vld [vmem:[%s4891_s5 + $0x368] sm:$0xff]  ;;  %v2643_v27 = vld [vmem:[%s4891_s5 + $0x730] sm:$0xff] }
 0x24b   : > { %3354 = vmatprep.subr.bf16.mxu1 %v3514_v61 }
 0x24c   : > { %3216 = vmatpush1.bf16.msra.mxu0 %v3215_v42  ;;  %v3263_v42 = vpack.c.bf16 %v2518_v34, %v2515_v33  ;;  %v2554_v33 = vld [vmem:[%s4891_s5 + $0x468] sm:$0xff]  ;;  %v3420_v34 = vpack.c.bf16 %v2646_v28, %v2643_v27 }
 0x24d   : > { %3218 = vmatprep.subr.bf16.mxu0 %v3217_v43  ;;  %v2521_v43 = vld [vmem:[%s4891_s5 + $0x360] sm:$0xff] }
 0x24e   : > { %3356 = vmatpush3.bf16.msra.mxu1 %v3355_v50  ;;  %v2528_v50 = vld [vmem:[%s4891_s5 + $0x398] sm:$0xff]  ;;  %v3267_v54 = vpack.c.bf16 %v2524_v47, %v2521_v43 }
 0x24f   : > { %3357 = vmatprep.subr.bf16.mxu1 %v3514_v61  ;;  %v2560_v43 = vld [vmem:[%s4891_s5 + $0x498] sm:$0xff] }
 0x250   : > { %3220 = vmatpush1.bf16.msra.mxu0 %v3219_v55  ;;  %v3269_v55 = vpack.c.bf16 %v2531_v51, %v2528_v50  ;;  %v2567_v50 = vld [vmem:[%s4891_s5 + $0x4d0] sm:$0xff] }
 0x251   : > { %3222 = vmatprep.subr.bf16.mxu0 %v3221_v56  ;;  %v2527_v56 = vld [vmem:[%s4891_s5 + $0x390] sm:$0xff] }
 0x252   : > { %3359 = vmatpush3.bf16.msra.mxu1 %v3358_v59  ;;  %v2534_v59 = vld [vmem:[%s4891_s5 + $0x3c8] sm:$0xff]  ;;  %v3271_v1 = vpack.c.bf16 %v2530_v57, %v2527_v56  ;;  %v2655_v51 = vld [vmem:[%s4891_s5 + $0x790] sm:$0xff] }
 0x253   : > { %3360 = vmatprep.subr.bf16.mxu1 %v3514_v61  ;;  %v2566_v56 = vld [vmem:[%s4891_s5 + $0x4c8] sm:$0xff]  ;;  %v3458_v57 = vpack.c.bf16 %v2658_v52, %v2655_v51 }
 0x254   : > { %3224 = vmatpush1.bf16.msra.mxu0 %v3223_v2  ;;  %v3273_v2 = vpack.c.bf16 %v2537_v60, %v2534_v59  ;;  %v2573_v59 = vld [vmem:[%s4891_s5 + $0x500] sm:$0xff] }
 0x255   : > { %3226 = vmatprep.subr.bf16.mxu0 %v3225_v3  ;;  %v2533_v3 = vld [vmem:[%s4891_s5 + $0x3c0] sm:$0xff] }
 0x256   : > { %3362 = vmatpush3.bf16.msra.mxu1 %v3361_v5  ;;  %v2540_v5 = vld [vmem:[%s4891_s5 + $0x3f8] sm:$0xff]  ;;  %v3275_v7 = vpack.c.bf16 %v2536_v46, %v2533_v3  ;;  %v2661_v60 = vld [vmem:[%s4891_s5 + $0x7c0] sm:$0xff] }
 0x257   : > { %3363 = vmatprep.subr.bf16.mxu1 %v3514_v61  ;;  %v3461_v3 = vpack.c.bf16 %v2664_v62, %v2661_v60  ;;  %v2576_v46 = vld [vmem:[%s4891_s5 + $0x518] sm:$0xff] }
 0x258   : > { %3228 = vmatpush1.bf16.msra.mxu0 %v3227_v8  ;;  %v3277_v8 = vpack.c.bf16 %v2543_v6, %v2540_v5  ;;  %v2667_v5 = vld [vmem:[%s4891_s5 + $0x7f0] sm:$0xff]  ;;  %v2670_v6 = vld [vmem:[%s4891_s5 + $0x808] sm:$0xff] }
 0x259   : > { %3230 = vmatprep.subr.bf16.mxu0 %v3229_v9  ;;  %v2539_v9 = vld [vmem:[%s4891_s5 + $0x3f0] sm:$0xff] }
 0x25a   : > { %3365 = vmatpush3.bf16.msra.mxu1 %v3364_v13  ;;  %v2546_v13 = vld [vmem:[%s4891_s5 + $0x428] sm:$0xff]  ;;  %v3279_v20 = vpack.c.bf16 %v2542_v10, %v2539_v9  ;;  %v3464_v9 = vpack.c.bf16 %v2670_v6, %v2667_v5  ;;  %v2611_v5 = vld [vmem:[%s4891_s5 + $0x630] sm:$0xff] }
 0x25b   : > { %3366 = vmatprep.subr.bf16.mxu1 %v3514_v61  ;;  %v2582_v10 = vld [vmem:[%s4891_s5 + $0x548] sm:$0xff] }
 0x25c   : > { %3232 = vmatpush1.bf16.msra.mxu0 %v3231_v21  ;;  %v3281_v21 = vpack.c.bf16 %v2549_v15, %v2546_v13  ;;  %v2673_v13 = vld [vmem:[%s4891_s5 + $0x820] sm:$0xff]  ;;  %v2676_v15 = vld [vmem:[%s4891_s5 + $0x838] sm:$0xff]  ;;  %v2614_v6 = vld [vmem:[%s4891_s5 + $0x648] sm:$0xff] }
 0x25d   : > { %3258 = vmatprep.subr.bf16.mxu0 %v3257_v22  ;;  %v2545_v22 = vld [vmem:[%s4891_s5 + $0x420] sm:$0xff] }
 0x25e   : > { %3368 = vmatpush3.bf16.msra.mxu1 %v3367_v25  ;;  %v2552_v25 = vld [vmem:[%s4891_s5 + $0x458] sm:$0xff]  ;;  %v3283_v30 = vpack.c.bf16 %v2548_v23, %v2545_v22  ;;  %v3467_v22 = vpack.c.bf16 %v2676_v15, %v2673_v13  ;;  %v2623_v15 = vld [vmem:[%s4891_s5 + $0x690] sm:$0xff] }
 0x25f   : > { %1319 = vmatmul.mubr.f32.vlgmr.msra.gmra.mrb[6].mxu0 %v1252_v18  ;;  %3401 = vmatprep.subr.bf16.mxu1 %v3514_v61  ;;  %v3265_v18 = vpack.c.bf16 %v2525_v38, %v2522_v37  ;;  %v2561_v37 = vld [vmem:[%s4891_s5 + $0x4a0] sm:$0xff]  ;;  %v2588_v23 = vld [vmem:[%s4891_s5 + $0x578] sm:$0xff] }
 0x260   : > { %3260 = vmatpush1.bf16.msra.mxu0 %v3259_v31  ;;  %1538 = vmatprep.mubr.f32.mxu0 %v3513_v63  ;;  %v3285_v31 = vpack.c.bf16 %v2555_v26, %v2552_v25  ;;  %v2649_v38 = vld [vmem:[%s4891_s5 + $0x760] sm:$0xff]  ;;  %v2679_v25 = vld [vmem:[%s4891_s5 + $0x850] sm:$0xff]  ;;  %v2682_v26 = vld [vmem:[%s4891_s5 + $0x868] sm:$0xff] }
 0x261   : > { %2977 = vmatmul.mubr.f32.vlgmr.msra.gmra.mrb[8].mxu1 %v1692_v39  ;;  %3262 = vmatprep.subr.bf16.mxu0 %v3261_v32  ;;  %v2551_v32 = vld [vmem:[%s4891_s5 + $0x450] sm:$0xff]  ;;  %v3423_v47 = vpack.c.bf16 %v2652_v40, %v2649_v38 }
 0x262   : > { %3403 = vmatpush3.bf16.msra.mxu1 %v3402_v35  ;;  %3011 = vmatprep.mubr.msk.f32.mxu1 %vm3515_vm4, %v3513_v63  ;;  %v2558_v35 = vld [vmem:[%s4891_s5 + $0x488] sm:$0xff]  ;;  %v3287_v41 = vpack.c.bf16 %v2554_v33, %v2551_v32  ;;  %v3470_v32 = vpack.c.bf16 %v2682_v26, %v2679_v25  ;;  %v2636_v25 = vld [vmem:[%s4891_s5 + $0x6f8] sm:$0xff]  ;;  %v2639_v26 = vld [vmem:[%s4891_s5 + $0x710] sm:$0xff] }
 0x263   : > { %3404 = vmatprep.subr.bf16.mxu1 %v3514_v61  ;;  %v2594_v33 = vld [vmem:[%s4891_s5 + $0x5a8] sm:$0xff] }
 0x264   : > { %3264 = vmatpush1.bf16.msra.mxu0 %v3263_v42  ;;  %v3313_v42 = vpack.c.bf16 %v2561_v37, %v2558_v35  ;;  %v2685_v35 = vld [vmem:[%s4891_s5 + $0x880] sm:$0xff]  ;;  %v2688_v37 = vld [vmem:[%s4891_s5 + $0x898] sm:$0xff] }
 0x265   : > { %3266 = vmatprep.subr.bf16.mxu0 %v3265_v18  ;;  %v2557_v18 = vld [vmem:[%s4891_s5 + $0x480] sm:$0xff] }
 0x266   : > { %3406 = vmatpush3.bf16.msra.mxu1 %v3405_v49  ;;  %v2564_v49 = vld [vmem:[%s4891_s5 + $0x4b8] sm:$0xff]  ;;  %v3315_v53 = vpack.c.bf16 %v2560_v43, %v2557_v18  ;;  %v3473_v18 = vpack.c.bf16 %v2688_v37, %v2685_v35  ;;  %v2641_v37 = vld [vmem:[%s4891_s5 + $0x720] sm:$0xff] }
 0x267   : > { %3407 = vmatprep.subr.bf16.mxu1 %v3514_v61  ;;  %v2600_v43 = vld [vmem:[%s4891_s5 + $0x5d8] sm:$0xff] }
 0x268   : > { %3268 = vmatpush1.bf16.msra.mxu0 %v3267_v54  ;;  %v3317_v54 = vpack.c.bf16 %v2567_v50, %v2564_v49  ;;  %v2691_v49 = vld [vmem:[%s4891_s5 + $0x8b0] sm:$0xff]  ;;  %v2694_v50 = vld [vmem:[%s4891_s5 + $0x8c8] sm:$0xff] }
 0x269   : > { %3270 = vmatprep.subr.bf16.mxu0 %v3269_v55  ;;  %v2563_v55 = vld [vmem:[%s4891_s5 + $0x4b0] sm:$0xff] }
 0x26a   : > { %3409 = vmatpush3.bf16.msra.mxu1 %v3408_v58  ;;  %v2570_v58 = vld [vmem:[%s4891_s5 + $0x4e8] sm:$0xff]  ;;  %v3319_v0 = vpack.c.bf16 %v2566_v56, %v2563_v55  ;;  %v3476_v55 = vpack.c.bf16 %v2694_v50, %v2691_v49  ;;  %v2657_v50 = vld [vmem:[%s4891_s5 + $0x7a0] sm:$0xff] }
 0x26b   : > { %3410 = vmatprep.subr.bf16.mxu1 %v3514_v61  ;;  %v2606_v56 = vld [vmem:[%s4891_s5 + $0x608] sm:$0xff] }
 0x26c   : > { %3272 = vmatpush1.bf16.msra.mxu0 %v3271_v1  ;;  %v3321_v1 = vpack.c.bf16 %v2573_v59, %v2570_v58  ;;  %v2697_v58 = vld [vmem:[%s4891_s5 + $0x8e0] sm:$0xff]  ;;  %v2700_v59 = vld [vmem:[%s4891_s5 + $0x8f8] sm:$0xff]  ;;  %v2654_v49 = vld [vmem:[%s4891_s5 + $0x788] sm:$0xff] }
 0x26d   : > { %3274 = vmatprep.subr.bf16.mxu0 %v3273_v2  ;;  %v2572_v2 = vld [vmem:[%s4891_s5 + $0x4f8] sm:$0xff] }
 0x26e   : > { %3412 = vmatpush3.bf16.msra.mxu1 %v3411_v4  ;;  %v2579_v4 = vld [vmem:[%s4891_s5 + $0x530] sm:$0xff] }
 0x26f   : > { %3413 = vmatprep.subr.bf16.mxu1 %v3514_v61  ;;  %v3325_v36 = vpack.c.bf16 %v2579_v4, %v2576_v46 }
 0x270   : > { %3276 = vmatpush1.bf16.msra.mxu0 %v3275_v7  ;;  %v2575_v7 = vld [vmem:[%s4891_s5 + $0x510] sm:$0xff] }
 0x271   : > { %3278 = vmatprep.subr.bf16.mxu0 %v3277_v8  ;;  %v2578_v8 = vld [vmem:[%s4891_s5 + $0x528] sm:$0xff] }
 0x272   : > { %3415 = vmatpush3.bf16.msra.mxu1 %v3414_v11  ;;  %v2585_v11 = vld [vmem:[%s4891_s5 + $0x560] sm:$0xff]  ;;  %v3327_v16 = vpack.c.bf16 %v2578_v8, %v2575_v7  ;;  %v3375_v7 = vpack.c.bf16 %v2614_v6, %v2611_v5  ;;  %v2671_v6 = vld [vmem:[%s4891_s5 + $0x810] sm:$0xff] }
 0x273   : > { %3416 = vmatprep.subr.bf16.mxu1 %v3514_v61  ;;  %v3329_v17 = vpack.c.bf16 %v2585_v11, %v2582_v10  ;;  %v2627_v10 = vld [vmem:[%s4891_s5 + $0x6b0] sm:$0xff] }
 0x274   : > { %3280 = vmatpush1.bf16.msra.mxu0 %v3279_v20  ;;  %v2581_v20 = vld [vmem:[%s4891_s5 + $0x540] sm:$0xff] }
 0x275   : > { %3282 = vmatprep.subr.bf16.mxu0 %v3281_v21  ;;  %v2584_v21 = vld [vmem:[%s4891_s5 + $0x558] sm:$0xff] }
 0x276   : > { %3418 = vmatpush3.bf16.msra.mxu1 %v3417_v24  ;;  %v2591_v24 = vld [vmem:[%s4891_s5 + $0x590] sm:$0xff]  ;;  %v3331_v27 = vpack.c.bf16 %v2584_v21, %v2581_v20  ;;  %v2633_v20 = vld [vmem:[%s4891_s5 + $0x6e0] sm:$0xff] }
 0x277   : > { %3419 = vmatprep.subr.bf16.mxu1 %v3514_v61  ;;  %v3333_v28 = vpack.c.bf16 %v2591_v24, %v2588_v23  ;;  %v2629_v23 = vld [vmem:[%s4891_s5 + $0x6c0] sm:$0xff]  ;;  %v2632_v24 = vld [vmem:[%s4891_s5 + $0x6d8] sm:$0xff] }
 0x278   : > { %3284 = vmatpush1.bf16.msra.mxu0 %v3283_v30  ;;  %v2587_v30 = vld [vmem:[%s4891_s5 + $0x570] sm:$0xff] }
 0x279   : > { %3286 = vmatprep.subr.bf16.mxu0 %v3285_v31  ;;  %v2590_v31 = vld [vmem:[%s4891_s5 + $0x588] sm:$0xff] }
 0x27a   : > { %3421 = vmatpush3.bf16.msra.mxu1 %v3420_v34  ;;  %v2597_v34 = vld [vmem:[%s4891_s5 + $0x5c0] sm:$0xff]  ;;  %v3335_v38 = vpack.c.bf16 %v2590_v31, %v2587_v30  ;;  %v2635_v30 = vld [vmem:[%s4891_s5 + $0x6f0] sm:$0xff]  ;;  %v2638_v31 = vld [vmem:[%s4891_s5 + $0x708] sm:$0xff] }
 0x27b   : > { %3422 = vmatprep.subr.bf16.mxu1 %v3514_v61  ;;  %v3337_v40 = vpack.c.bf16 %v2597_v34, %v2594_v33  ;;  %v2645_v33 = vld [vmem:[%s4891_s5 + $0x740] sm:$0xff]  ;;  %v3391_v34 = vpack.c.bf16 %v2638_v31, %v2635_v30  ;;  %v2695_v31 = vld [vmem:[%s4891_s5 + $0x8d0] sm:$0xff] }
 0x27c   : > { %3288 = vmatpush1.bf16.msra.mxu0 %v3287_v41  ;;  %v2593_v41 = vld [vmem:[%s4891_s5 + $0x5a0] sm:$0xff] }
 0x27d   : > { %3314 = vmatprep.subr.bf16.mxu0 %v3313_v42  ;;  %v2596_v42 = vld [vmem:[%s4891_s5 + $0x5b8] sm:$0xff] }
 0x27e   : > { %3424 = vmatpush3.bf16.msra.mxu1 %v3423_v47  ;;  %v2603_v47 = vld [vmem:[%s4891_s5 + $0x5f0] sm:$0xff]  ;;  %v3339_v51 = vpack.c.bf16 %v2596_v42, %v2593_v41 }
 0x27f   : > { %1539 = vmatmul.mubr.f32.vlgmr.msra.gmra.mrb[8].mxu0 %v1472_v19  ;;  %3457 = vmatprep.subr.bf16.mxu1 %v3514_v61  ;;  %v2569_v19 = vld [vmem:[%s4891_s5 + $0x4e0] sm:$0xff]  ;;  %v3341_v52 = vpack.c.bf16 %v2603_v47, %v2600_v43  ;;  %v2651_v41 = vld [vmem:[%s4891_s5 + $0x770] sm:$0xff]  ;;  %v2650_v47 = vld [vmem:[%s4891_s5 + $0x768] sm:$0xff] }
 0x280   : > { %3316 = vmatpush1.bf16.msra.mxu0 %v3315_v53  ;;  %1758 = vmatprep.mubr.f32.mxu0 %v3513_v63  ;;  %v3323_v29 = vpack.c.bf16 %v2572_v2, %v2569_v19  ;;  %v2599_v53 = vld [vmem:[%s4891_s5 + $0x5d0] sm:$0xff]  ;;  %v3479_v19 = vpack.c.bf16 %v2700_v59, %v2697_v58  ;;  %v2612_v2 = vld [vmem:[%s4891_s5 + $0x638] sm:$0xff] }
 0x281   : > { %3012 = vmatmul.mubr.f32.vlgmr.msra.gmra.mrb[10].mxu1 %v4078_v12  ;;  %3318 = vmatprep.subr.bf16.mxu0 %v3317_v54  ;;  %v2602_v54 = vld [vmem:[%s4891_s5 + $0x5e8] sm:$0xff]  ;;  %v2647_v43 = vld [vmem:[%s4891_s5 + $0x750] sm:$0xff] }
 0x282   : > { %3459 = vmatpush3.bf16.msra.mxu1 %v3458_v57  ;;  %3046 = vmatprep.mubr.msk.f32.mxu1 %vm3515_vm4, %v3513_v63  ;;  %v2609_v57 = vld [vmem:[%s4891_s5 + $0x620] sm:$0xff]  ;;  %v3343_v60 = vpack.c.bf16 %v2602_v54, %v2599_v53  ;;  %v2656_v54 = vld [vmem:[%s4891_s5 + $0x798] sm:$0xff]  ;;  %v2659_v59 = vld [vmem:[%s4891_s5 + $0x7b0] sm:$0xff] }
 0x283   : > { %3460 = vmatprep.subr.bf16.mxu1 %v3514_v61  ;;  %v3369_v62 = vpack.c.bf16 %v2609_v57, %v2606_v56  ;;  %v2653_v53 = vld [vmem:[%s4891_s5 + $0x780] sm:$0xff]  ;;  %v2663_v56 = vld [vmem:[%s4891_s5 + $0x7d0] sm:$0xff] }
 0x284   : > { %3320 = vmatpush1.bf16.msra.mxu0 %v3319_v0  ;;  %v2605_v0 = vld [vmem:[%s4891_s5 + $0x600] sm:$0xff]  ;;  %v3427_v57 = vpack.c.bf16 %v2656_v54, %v2653_v53 }
 0x285   : > { %3322 = vmatprep.subr.bf16.mxu0 %v3321_v1  ;;  %v2608_v1 = vld [vmem:[%s4891_s5 + $0x618] sm:$0xff] }
 0x286   : > { %3462 = vmatpush3.bf16.msra.mxu1 %v3461_v3  ;;  %v2615_v3 = vld [vmem:[%s4891_s5 + $0x650] sm:$0xff]  ;;  %v3371_v46 = vpack.c.bf16 %v2608_v1, %v2605_v0  ;;  %v2669_v0 = vld [vmem:[%s4891_s5 + $0x800] sm:$0xff] }
 0x287   : > { %3463 = vmatprep.subr.bf16.mxu1 %v3514_v61  ;;  %v3373_v4 = vpack.c.bf16 %v2615_v3, %v2612_v2  ;;  %v2665_v2 = vld [vmem:[%s4891_s5 + $0x7e0] sm:$0xff]  ;;  %v2668_v3 = vld [vmem:[%s4891_s5 + $0x7f8] sm:$0xff] }
 0x288   : > { %3324 = vmatpush1.bf16.msra.mxu0 %v3323_v29  ;;  %v2618_v29 = vld [vmem:[%s4891_s5 + $0x668] sm:$0xff] }
 0x289   : > { %3326 = vmatprep.subr.bf16.mxu0 %v3325_v36  ;;  %v2131_v36 = vrot.slane %v4078_v12, 2 }
 0x28a   : > { %3465 = vmatpush3.bf16.msra.mxu1 %v3464_v9  ;;  %v2617_v9 = vld [vmem:[%s4891_s5 + $0x660] sm:$0xff] }
 0x28b   : > { %3466 = vmatprep.subr.bf16.mxu1 %v3514_v61  ;;  %v3379_v11 = vpack.c.bf16 %v2620_v14, %v2617_v9  ;;  %v2677_v14 = vld [vmem:[%s4891_s5 + $0x840] sm:$0xff] }
 0x28c   : > { %3328 = vmatpush1.bf16.msra.mxu0 %v3327_v16  ;;  %v2626_v16 = vld [vmem:[%s4891_s5 + $0x6a8] sm:$0xff] }
 0x28d   : > { %3330 = vmatprep.subr.bf16.mxu0 %v3329_v17  ;;  %v2630_v17 = vld [vmem:[%s4891_s5 + $0x6c8] sm:$0xff]  ;;  %v3383_v21 = vpack.c.bf16 %v2626_v16, %v2623_v15  ;;  %v2683_v16 = vld [vmem:[%s4891_s5 + $0x870] sm:$0xff] }
 0x28e   : > { %3468 = vmatpush3.bf16.msra.mxu1 %v3467_v22  ;;  %v3385_v22 = vpack.c.bf16 %v2633_v20, %v2630_v17  ;;  %v2686_v17 = vld [vmem:[%s4891_s5 + $0x888] sm:$0xff] }
 0x28f   : > { %3469 = vmatprep.subr.bf16.mxu1 %v3514_v61  ;;  %v2690_v20 = vld [vmem:[%s4891_s5 + $0x8a8] sm:$0xff] }
 0x290   : > { %3332 = vmatpush1.bf16.msra.mxu0 %v3331_v27  ;;  %v3387_v27 = vpack.c.bf16 %v2632_v24, %v2629_v23  ;;  %v2689_v24 = vld [vmem:[%s4891_s5 + $0x8a0] sm:$0xff] }
 0x291   : > { %3334 = vmatprep.subr.bf16.mxu0 %v3333_v28  ;;  %v3389_v28 = vpack.c.bf16 %v2639_v26, %v2636_v25  ;;  %v2692_v25 = vld [vmem:[%s4891_s5 + $0x8b8] sm:$0xff] }
 0x292   : > { %3471 = vmatpush3.bf16.msra.mxu1 %v3470_v32  ;;  %v2642_v32 = vld [vmem:[%s4891_s5 + $0x728] sm:$0xff]  ;;  %v2696_v26 = vld [vmem:[%s4891_s5 + $0x8d8] sm:$0xff] }
 0x293   : > { %3472 = vmatprep.subr.bf16.mxu1 %v3514_v61  ;;  %v3393_v35 = vpack.c.bf16 %v2645_v33, %v2642_v32  ;;  %v2698_v32 = vld [vmem:[%s4891_s5 + $0x8e8] sm:$0xff] }
 0x294   : > { %3336 = vmatpush1.bf16.msra.mxu0 %v3335_v38  ;;  %v2644_v38 = vld [vmem:[%s4891_s5 + $0x738] sm:$0xff]  ;;  %v3455_v33 = vpack.c.bf16 %v2698_v32, %v2695_v31 }
 0x295   : > { %3338 = vmatprep.subr.bf16.mxu0 %v3337_v40  ;;  %v2648_v40 = vld [vmem:[%s4891_s5 + $0x758] sm:$0xff]  ;;  %v3395_v42 = vpack.c.bf16 %v2644_v38, %v2641_v37 }
 0x296   : > { %3474 = vmatpush3.bf16.msra.mxu1 %v3473_v18  ;;  %v3397_v18 = vpack.c.bf16 %v2651_v41, %v2648_v40  ;;  %v3516_v41 = vmov 1966171168  }
 0x297   : > { %3475 = vmatprep.subr.bf16.mxu1 %v3514_v61 }
 0x298   : > { %3340 = vmatpush1.bf16.msra.mxu0 %v3339_v51  ;;  %v3399_v51 = vpack.c.bf16 %v2650_v47, %v2647_v43 }
 0x299   : > { %3342 = vmatprep.subr.bf16.mxu0 %v3341_v52  ;;  %v3425_v52 = vpack.c.bf16 %v2657_v50, %v2654_v49 }
 0x29a   : > { %3477 = vmatpush3.bf16.msra.mxu1 %v3476_v55  ;;  %v2660_v55 = vld [vmem:[%s4891_s5 + $0x7b8] sm:$0xff] }
 0x29b   : > { %3478 = vmatprep.subr.bf16.mxu1 %v3514_v61  ;;  %v2621_v61 = vld [vmem:[%s4891_s5 + $0x680] sm:$0xff]  ;;  %v3429_v58 = vpack.c.bf16 %v2663_v56, %v2660_v55 }
 0x29c   : > { %3344 = vmatpush1.bf16.msra.mxu0 %v3343_v60  ;;  %v3377_v8 = vpack.c.bf16 %v2621_v61, %v2618_v29  ;;  %v2662_v60 = vld [vmem:[%s4891_s5 + $0x7c8] sm:$0xff] }
 0x29d   : > { %3370 = vmatprep.subr.bf16.mxu0 %v3369_v62  ;;  %v2666_v62 = vld [vmem:[%s4891_s5 + $0x7e8] sm:$0xff]  ;;  %v3431_v1 = vpack.c.bf16 %v2662_v60, %v2659_v59 }
 0x29e   : > { %3480 = vmatpush3.bf16.msra.mxu1 %v3479_v19  ;;  %v3433_v19 = vpack.c.bf16 %v2669_v0, %v2666_v62  ;;  %v2674_v29 = vld [vmem:[%s4891_s5 + $0x828] sm:$0xff]  ;;  %v984_v62 = vld [vmem:[%s4892_s6] sm:$0x7] }
 0x29f   : > { %1759 = vmatmul.mubr.f32.vlgmr.msra.gmra.mrb[10].mxu0 %v1692_v39  ;;  %v2624_v39 = vld [vmem:[%s4891_s5 + $0x698] sm:$0xff]  ;;  %v2678_v61 = vld [vmem:[%s4891_s5 + $0x848] sm:$0xff] }
 0x2a0   : > { %3372 = vmatpush1.bf16.msra.mxu0 %v3371_v46  ;;  %1976 = vmatprep.mubr.f32.mxu0 %v3513_v63  ;;  %v3381_v13 = vpack.c.bf16 %v2627_v10, %v2624_v39  ;;  %v2672_v46 = vld [vmem:[%s4891_s5 + $0x818] sm:$0xff] }
 0x2a1   : > { %3047 = vmatmul.mubr.f32.vlgmr.msra.gmra.mrb[12].mxu1 %v2131_v36  ;;  %3374 = vmatprep.subr.bf16.mxu0 %v3373_v4  ;;  %v2675_v4 = vld [vmem:[%s4891_s5 + $0x830] sm:$0xff]  ;;  %v2680_v39 = vld [vmem:[%s4891_s5 + $0x858] sm:$0xff] }
 0x2a2   : > { %v3437_v5 = vpack.c.bf16 %v2675_v4, %v2672_v46  ;;  %v2684_v10 = vld [vmem:[%s4891_s5 + $0x878] sm:$0xff] }
 0x2a4   : > { %3376 = vmatpush1.bf16.msra.mxu0 %v3375_v7  ;;  %v2681_v7 = vld [vmem:[%s4891_s5 + $0x860] sm:$0xff] }
 0x2a5   : > { %3378 = vmatprep.subr.bf16.mxu0 %v3377_v8  ;;  %v3439_v8 = vpack.c.bf16 %v2674_v29, %v2671_v6  ;;  %v3441_v9 = vpack.c.bf16 %v2681_v7, %v2678_v61 }
 0x2a8   : > { %3380 = vmatpush1.bf16.msra.mxu0 %v3379_v11  ;;  %v2687_v11 = vld [vmem:[%s4891_s5 + $0x890] sm:$0xff] }
 0x2a9   : > { %3382 = vmatprep.subr.bf16.mxu0 %v3381_v13  ;;  %v3443_v13 = vpack.c.bf16 %v2680_v39, %v2677_v14  ;;  %v3445_v15 = vpack.c.bf16 %v2687_v11, %v2684_v10 }
 0x2ac   : > { %3384 = vmatpush1.bf16.msra.mxu0 %v3383_v21  ;;  %v2693_v21 = vld [vmem:[%s4891_s5 + $0x8c0] sm:$0xff] }
 0x2ad   : > { %3386 = vmatprep.subr.bf16.mxu0 %v3385_v22  ;;  %v3447_v22 = vpack.c.bf16 %v2686_v17, %v2683_v16  ;;  %v3449_v23 = vpack.c.bf16 %v2693_v21, %v2690_v20 }
 0x2b0   : > { %3388 = vmatpush1.bf16.msra.mxu0 %v3387_v27  ;;  %v2699_v27 = vld [vmem:[%s4891_s5 + $0x8f0] sm:$0xff] }
 0x2b1   : > { %3390 = vmatprep.subr.bf16.mxu0 %v3389_v28  ;;  %v3451_v28 = vpack.c.bf16 %v2692_v25, %v2689_v24  ;;  %v3453_v30 = vpack.c.bf16 %v2699_v27, %v2696_v26 }
 0x2b4   : > { %3392 = vmatpush1.bf16.msra.mxu0 %v3391_v34 }
 0x2b5   : > { %3394 = vmatprep.subr.bf16.mxu0 %v3393_v35 }
 0x2b8   : > { %3396 = vmatpush1.bf16.msra.mxu0 %v3395_v42  ;;  %v1179_v42 = vunpack.c.l.s4 %v3516_v41 }
 0x2b9   : > { %3398 = vmatprep.subr.bf16.mxu0 %v3397_v18 }
 0x2ba   : > { %v1180_v18 = vunpack.c.0.s8 %v1179_v42  ;;  %v2316_v42 = vsub.s32 2, %v4053_v44 }
 0x2bc   : > { %3400 = vmatpush1.bf16.msra.mxu0 %v3399_v51  ;;  %v1183_v43 = vsub.s32 %v1180_v18, %v4053_v44 }
 0x2bd   : > { %3426 = vmatprep.subr.bf16.mxu0 %v3425_v52 }
 0x2bf   : > { %1977 = vmatmul.mubr.f32.vlgmr.msra.gmra.mrb[12].mxu0 %v4078_v12 }
 0x2c0   : > { %3428 = vmatpush1.bf16.msra.mxu0 %v3427_v57  ;;  %2197 = vmatprep.mubr.f32.mxu0 %v3513_v63  ;;  %v3435_v63 = vpack.c.bf16 %v2668_v3, %v2665_v2 }
 0x2c1   : > { %3430 = vmatprep.subr.bf16.mxu0 %v3429_v58 }
 0x2c4   : > { %3432 = vmatpush1.bf16.msra.mxu0 %v3431_v1 }
 0x2c5   : > { %3434 = vmatprep.subr.bf16.mxu0 %v3433_v19 }
 0x2c8   : > { %3436 = vmatpush1.bf16.msra.mxu0 %v3435_v63 }
 0x2c9   : > { %3438 = vmatprep.subr.bf16.mxu0 %v3437_v5 }
 0x2cc   : > { %3440 = vmatpush1.bf16.msra.mxu0 %v3439_v8 }
 0x2cd   : > { %3442 = vmatprep.subr.bf16.mxu0 %v3441_v9 }
 0x2d0   : > { %3444 = vmatpush1.bf16.msra.mxu0 %v3443_v13 }
 0x2d1   : > { %3446 = vmatprep.subr.bf16.mxu0 %v3445_v15 }
 0x2d4   : > { %3448 = vmatpush1.bf16.msra.mxu0 %v3447_v22 }
 0x2d5   : > { %3450 = vmatprep.subr.bf16.mxu0 %v3449_v23 }
 0x2d8   : > { %3452 = vmatpush1.bf16.msra.mxu0 %v3451_v28 }
 0x2d9   : > { %3454 = vmatprep.subr.bf16.mxu0 %v3453_v30 }
 0x2dc   : > { %3456 = vmatpush1.bf16.msra.mxu0 %v3455_v33 }
 0x2df   : > { %2198 = vmatmul.mubr.f32.vlgmr.msra.gmra.mrb[14].mxu0 %v2131_v36 }
 0x2f2   : > { %v1099_v34 = vpop.f32.mrb[2].mxu0 }
 0x2f3   : > { %v1101_v35 = vpop.f32.mrb[3].mxu0 }
 0x2f4   : > { %v1177_v37 = vcombine.low %v1099_v34, %v1101_v35  ;;  %v1391_v38 = vpop.f32.mrb[4].mxu1 }
 0x2f5   : > { %v2908_v40 = vpop.f32.mrb[5].mxu1  ;;  %v1412_v58 = vrot.slane %v1391_v38, %v1183_v43 }
 0x2f6   : > { %v1184_v49 = vrot.slane %v1177_v37, %v1183_v43  ;;  %v2303_v40 = vld [vmem:[%s4893_s7] sm:$0x7] }
 0x312   : > { %v1170_v47 = vpop.f32.mrb[4].mxu0 }
 0x313   : > { %v1191_v50 = vrot.slane %v1170_v47, %v1183_v43  ;;  %v2873_v51 = vpop.f32.mrb[5].mxu0 }
 0x314   : > { %v1611_v52 = vpop.f32.mrb[6].mxu1 }
 0x315   : > { %v1192_v53 = vcombine.low %v1184_v49, %v1191_v50  ;;  %v2943_v54 = vpop.f32.mrb[7].mxu1  ;;  %v1632_v6 = vrot.slane %v1611_v52, %v1183_v43 }
 0x317   : > { %v1199_v59 = vrot.slane %v1192_v53, %v1183_v43 }
 0x319   : > { %v1201_v1 = vadd.f32 %v1199_v59, %v984_v62 }
 0x332   : > { %v1320_v55 = vpop.f32.mrb[6].mxu0 }
 0x333   : > { %v1322_v12 = vpop.f32.mrb[7].mxu0 }
 0x334   : > { %v1398_v36 = vcombine.low %v1320_v55, %v1322_v12  ;;  %v1831_v56 = vpop.f32.mrb[8].mxu1  ;;  %v2330_v55 = vld [vmem:[#allocation2] sm:$0x1] }
 0x335   : > { %v2978_v57 = vpop.f32.mrb[9].mxu1  ;;  %v1852_v13 = vrot.slane %v1831_v56, %v1183_v43 }
 0x336   : > { %v1405_v60 = vrot.slane %v1398_v36, %v1183_v43 }
 0x338   : > { %v1413_v0 = vcombine.low %v1405_v60, %v1412_v58 }
 0x33a   : > { %v1420_v19 = vrot.slane %v1413_v0, %v1183_v43 }
 0x33c   : > { %v1422_v2 = vadd.f32 %v1420_v19, %v1201_v1 }
 0x352   : > { %v1540_v3 = vpop.f32.mrb[8].mxu0 }
 0x353   : > { %v1542_v46 = vpop.f32.mrb[9].mxu0 }
 0x354   : > { %v1618_v4 = vcombine.low %v1540_v3, %v1542_v46  ;;  %v2049_v63 = vpop.f32.mrb[10].mxu1 }
 0x355   : > { %v3013_v5 = vpop.f32.mrb[11].mxu1  ;;  %v2070_v24 = vrot.slane %v2049_v63, %v1183_v43 }
 0x356   : > { %v1625_v29 = vrot.slane %v1618_v4, %v1183_v43 }
 0x358   : > { %v1633_v61 = vcombine.low %v1625_v29, %v1632_v6 }
 0x35a   : > { %v1640_v7 = vrot.slane %v1633_v61, %v1183_v43 }
 0x35c   : > { %v1642_v8 = vadd.f32 %v1640_v7, %v1422_v2 }
 0x372   : > { %v1760_v9 = vpop.f32.mrb[10].mxu0 }
 0x373   : > { %v1762_v14 = vpop.f32.mrb[11].mxu0 }
 0x374   : > { %v1838_v39 = vcombine.low %v1760_v9, %v1762_v14  ;;  %v2270_v10 = vpop.f32.mrb[12].mxu1 }
 0x375   : > { %v3048_v11 = vpop.f32.mrb[13].mxu1  ;;  %v2291_v33 = vrot.slane %v2270_v10, %v1183_v43 }
 0x376   : > { %v1845_v15 = vrot.slane %v1838_v39, %v1183_v43 }
 0x378   : > { %v1853_v16 = vcombine.low %v1845_v15, %v1852_v13 }
 0x37a   : > { %v1860_v17 = vrot.slane %v1853_v16, %v1183_v43 }
 0x37c   : > { %v1862_v20 = vadd.f32 %v1860_v17, %v1642_v8 }
 0x392   : > { %v1978_v21 = vpop.f32.mrb[12].mxu0 }
 0x393   : > { %v1980_v22 = vpop.f32.mrb[13].mxu0 }
 0x394   : > { %v2056_v23 = vcombine.low %v1978_v21, %v1980_v22 }
 0x396   : > { %v2063_v25 = vrot.slane %v2056_v23, %v1183_v43 }
 0x398   : > { %v2071_v26 = vcombine.low %v2063_v25, %v2070_v24 }
 0x39a   : > { %v2078_v27 = vrot.slane %v2071_v26, %v1183_v43 }
 0x39c   : > { %v2080_v28 = vadd.f32 %v2078_v27, %v1862_v20 }
 0x3b2   : > { %v2199_v30 = vpop.f32.mrb[14].mxu0 }
 0x3b3   : > { %v2201_v31 = vpop.f32.mrb[15].mxu0 }
 0x3b4   : > { %v2277_v32 = vcombine.low %v2199_v30, %v2201_v31 }
 0x3b6   : > { %v2284_v34 = vrot.slane %v2277_v32, %v1183_v43 }
 0x3b8   : > { %v2292_v35 = vcombine.low %v2284_v34, %v2291_v33 }
 0x3ba   : > { %v2299_v37 = vrot.slane %v2292_v35, %v1183_v43 }
 0x3bc   : > { %v2301_v38 = vadd.f32 %v2299_v37, %v2080_v28 }
 0x3be   : > { %v2302_v41 = vmax.f32 %v2301_v38, 0.0 }
 0x3c0   : > { %v2304_v18 = vmul.f32 %v2303_v40, %v2302_v41 }
 0x3c2   : > { %v2309_v47 = vrot.slane %v2304_v18, %v948_v45  ;;  %v2313_v49 = vrot.slane %v2304_v18, %v952_v48  ;;  %v2317_v50 = vrot.slane %v2304_v18, %v2316_v42 }
 0x3c4   : > { %v2322_v43 = vsel %vm2321_vm5, %v2309_v47, 0.0  ;;  %v2323_v51 = vsel %vm2321_vm5, %v2313_v49, 0.0  ;;  %v2326_v53 = vsel %vm2325_vm6, %v2317_v50, 0.0 }
 0x3c5   : > { %v2324_v52 = vadd.f32 %v2323_v51, %v2322_v43 }
 0x3c7   : > { %v2327_v54 = vadd.f32 %v2326_v53, %v2324_v52 }
 0x3c9   : > { %2328 = vadd.xlane.f32.xlu0 %v2327_v54 }
 0x456   : > { %v2329_v12 = vpop.xlane.xlu0 %2328 }
 0x457   : > { %v2331_v36 = vadd.f32 %v2330_v55, %v2329_v12 }
 0x459   : > { %2333 = vst.msk [vmem:[%s330_s22] sm:$0x1] %vm2332_vm7, %v2331_v36 }
 0x45a PF: > { %s21_s11 = sadd.s32 1, %s3511_s11  }
 0x45b   : > { %p18_p4 = scmp.ge.s32.totalorder %s21_s11, 4  }
 0x45d   :  { %20 = sbr.rel (!%p18_p4) target bundleno = 3 (0x3), region = 95 }

</bundles_post_ra>
